<compile_context>
chip_gen: v7x
topology: tpu7x:2x2x1
jax: 0.10.0
libtpu: 0.0.40
codegen_flags: <defaults>
</compile_context>

<pallas_src>
import functools

import jax
import jax.numpy as jnp
import numpy as np
from jax import lax
from jax.experimental import pallas as pl
from jax.experimental.pallas import tpu as pltpu


# dot_general dimension numbers for 2-D operands (no batch dims, no transposes)
_TN = (((0,), (0,)), ((), ()))   # contract dim0 of both: lhs^T @ rhs
_NT = (((1,), (1,)), ((), ()))   # contract dim1 of both: lhs @ rhs^T

_LANE = 128


# ----------------------------------------------------------------------------
# Weight packing: one (rows, 128) f32 slab, static row offsets
# ----------------------------------------------------------------------------
def _pack_weights(params, cp_list, dim_curr, linear_dim, inter):
    """Pack every weight/bias into one lane-padded slab.

    Returns (slab, offsets) where offsets[name] = (row0, nrows, ncols) are
    static Python ints used for static slicing inside the kernel.  Per-row
    biases are stored as one extra column next to their weight.
    """
    del cp_list, dim_curr, linear_dim, inter  # shapes come from the arrays
    entries = []

    def wb(w, b):
        return jnp.concatenate([jnp.asarray(w, jnp.float32),
                                jnp.asarray(b, jnp.float32)], axis=1)

    for i, blk in enumerate(params["blocks"]):
        b1, b2 = blk["block1"], blk["block2"]
        # block1: theta/phi/g all act on x_past -> stack into one (3I, Cp+1)
        entries.append((f"tpg1_{i}", wb(
            jnp.concatenate([b1["theta_w"], b1["phi_w"], b1["g_w"]], axis=0),
            jnp.concatenate([b1["theta_b"], b1["phi_b"], b1["g_b"]], axis=0))))
        entries.append((f"w1_{i}", wb(b1["w_w"], b1["w_b"])))          # (Cp, I+1)
        # block2: theta acts on x_curr, phi/g act on nle -> (I, Cc+1) + (2I, Cp+1)
        entries.append((f"th2_{i}", wb(b2["theta_w"], b2["theta_b"])))
        entries.append((f"pg2_{i}", wb(
            jnp.concatenate([b2["phi_w"], b2["g_w"]], axis=0),
            jnp.concatenate([b2["phi_b"], b2["g_b"]], axis=0))))
        entries.append((f"w2_{i}", wb(b2["w_w"], b2["w_b"])))          # (Cc, I+1)

    head = params["head"]
    entries.append(("lin_wt", jnp.asarray(head["lin_w"], jnp.float32).T))  # (n*L, L)
    entries.append(("lin_b", jnp.asarray(head["lin_b"], jnp.float32)))     # (1, L)
    entries.append(("ln_w", jnp.asarray(head["ln_w"], jnp.float32)))       # (Cc, L)
    entries.append(("ln_b", jnp.asarray(head["ln_b"], jnp.float32)))       # (Cc, L)

    offsets = {}
    rows = []
    row = 0
    for name, arr in entries:
        r, c = arr.shape
        assert c <= _LANE
        padded = jnp.pad(arr, ((0, (-r) % 8), (0, _LANE - c)))  # 8-row align, 128-lane pad
        offsets[name] = (row, r, c)
        rows.append(padded)
        row += padded.shape[0]
    slab = jnp.concatenate(rows, axis=0)                         # (rows, 128) f32
    return slab, offsets


# ----------------------------------------------------------------------------
# Single fused kernel: one batch element per grid step
# ----------------------------------------------------------------------------
def _make_fused_kernel(n_blocks, cp_list, dim_curr, linear_dim, inter, offsets):
    Cc, L, I = dim_curr, linear_dim, inter

    def kernel(*refs):
        # refs: [0:n] x_past_i (1,Cp_i,L) | [n] x_curr (1,Cc,L) | [n+1] weight slab | [n+2] out
        xp_refs = refs[:n_blocks]
        xc_ref = refs[n_blocks]
        w_ref = refs[n_blocks + 1]
        out_ref = refs[n_blocks + 2]

        xc = xc_ref[0]                                           # (Cc, L)

        def load(name):                                          # static slab slice -> values
            r0, nr, nc = offsets[name]
            return w_ref[r0:r0 + nr, 0:nc]

        def attention(theta, phi, g):
            # f[l, m] = sum_i theta[i, l] * phi[i, m]   (no explicit .T)
            f = lax.dot_general(theta, phi, _TN, preferred_element_type=jnp.float32)  # (L, L)
            f = f - jnp.max(f, axis=-1, keepdims=True)
            e = jnp.exp(f)
            p = e / jnp.sum(e, axis=-1, keepdims=True)           # exact (per perf review)
            # y[l, i] = sum_m p[l, m] * g[i, m]
            return lax.dot_general(p, g, _NT, preferred_element_type=jnp.float32)     # (L, I)

        lin_r0, _, _ = offsets["lin_wt"]
        acc = None
        for i in range(n_blocks):                                # unrolled at trace time
            Cp = cp_list[i]
            xp = xp_refs[i][0]                                   # (Cp, L)

            # ---- convBlock1_all: theta/phi/g all on x_past -> ONE stacked matmul
            tpg = load(f"tpg1_{i}")                              # (3I, Cp+1)
            proj = jnp.dot(tpg[:, :Cp], xp,
                           preferred_element_type=jnp.float32) + tpg[:, Cp:Cp + 1]
            y1 = attention(proj[0:I], proj[I:2 * I], proj[2 * I:3 * I])   # (L, I)
            w1 = load(f"w1_{i}")                                 # (Cp, I+1)
            wy1 = lax.dot_general(w1[:, :I], y1, _NT,
                                  preferred_element_type=jnp.float32) + w1[:, I:I + 1]
            nle = jnp.maximum(wy1 + xp, 0.0)                     # residual + ReLU, (Cp, L)

            # ---- convBlock2_all: theta on x_curr, [phi;g] stacked on nle
            th = load(f"th2_{i}")                                # (I, Cc+1)
            theta = jnp.dot(th[:, :Cc], xc,
                            preferred_element_type=jnp.float32) + th[:, Cc:Cc + 1]
            pg = load(f"pg2_{i}")                                # (2I, Cp+1)
            proj2 = jnp.dot(pg[:, :Cp], nle,
                            preferred_element_type=jnp.float32) + pg[:, Cp:Cp + 1]
            y2 = attention(theta, proj2[0:I], proj2[I:2 * I])    # (L, I)
            w2 = load(f"w2_{i}")                                 # (Cc, I+1)
            wy2 = lax.dot_general(w2[:, :I], y2, _NT,
                                  preferred_element_type=jnp.float32) + w2[:, I:I + 1]
            fut = jnp.maximum(wy2 + xc, 0.0)                     # (Cc, L)

            # ---- head Linear, concat-free: comb @ W^T == sum_i fut_i @ W^T_chunk_i
            wchunk = w_ref[lin_r0 + i * L: lin_r0 + (i + 1) * L, 0:L]     # (L, L)
            part = jnp.dot(fut, wchunk, preferred_element_type=jnp.float32)
            acc = part if acc is None else acc + part

        y = acc + load("lin_b")                                  # (Cc, L)

        # LayerNorm over the whole (Cc, L) slab (normalized_shape=[dim_curr, linear_dim])
        mu = jnp.mean(y, keepdims=True)
        var = jnp.mean((y - mu) ** 2, keepdims=True)
        yn = (y - mu) * lax.rsqrt(var + 1e-5)
        yn = yn * load("ln_w") + load("ln_b")
        yr = jnp.maximum(yn, 0.0)                                # ReLU; Dropout = identity (eval)

        # Lane-dense store: (Cc, L) -> (1, Cc*L); at Cc=4, L=32 this is exactly one
        # full 128-lane row (unmasked store + single contiguous output DMA).
        yflat = jnp.concatenate([yr[c:c + 1, :] for c in range(Cc)], axis=1)
        out_ref[0] = yflat

    return kernel


# ----------------------------------------------------------------------------
# Wrapper: one pallas_call for the entire forward
# ----------------------------------------------------------------------------
def network_in_network_forward(params, x_past_actual_all, x_curr_actual):
    blocks = params["blocks"]
    n = len(blocks)
    B, Cc, L = x_curr_actual.shape
    cp_list = [int(xp.shape[1]) for xp in x_past_actual_all]
    I = int(blocks[0]["block1"]["theta_w"].shape[0])

    # One packed weight slab (constant-folded by XLA when params are closed over
    # under jit): one grid-invariant input + 2-3 DMAs instead of ~37 tiny ones.
    slab, offsets = _pack_weights(params, cp_list, Cc, L, I)

    def data_spec(shape):
        return pl.BlockSpec((1,) + tuple(shape[1:]), lambda b: (b, 0, 0))

    in_specs = [data_spec(xp.shape) for xp in x_past_actual_all]
    in_specs.append(data_spec(x_curr_actual.shape))
    # Grid-invariant full-block spec for the slab.  It is ~0.1 MiB here, so the
    # default double-buffering / VMEM limits are a non-issue; revisit with
    # pl.Buffered(1) + vmem_limit_bytes only if weights grow (v7x: 64 MiB VMEM).
    in_specs.append(pl.BlockSpec(slab.shape, lambda b: (0, 0)))

    out = pl.pallas_call(
        _make_fused_kernel(n, cp_list, Cc, L, I, offsets),
        out_shape=jax.ShapeDtypeStruct((B, 1, Cc * L), jnp.float32),
        grid=(B,),
        in_specs=in_specs,
        out_specs=pl.BlockSpec((1, 1, Cc * L), lambda b: (b, 0, 0)),
        compiler_params=pltpu.CompilerParams(dimension_semantics=("parallel",)),
    )(*x_past_actual_all, x_curr_actual, slab)

    return out.reshape(B, Cc, L)


# ----------------------------------------------------------------------------
# Parameter construction (deterministic, in-script)
# ----------------------------------------------------------------------------
def _init_nonlocal_params(key, dim_curr_ch, dim_past_ch, inter):
    ks = jax.random.split(key, 4)
    s = 0.1
    return {
        "theta_w": s * jax.random.normal(ks[0], (inter, dim_curr_ch), jnp.float32),
        "theta_b": jnp.zeros((inter, 1), jnp.float32),
        "phi_w":   s * jax.random.normal(ks[1], (inter, dim_past_ch), jnp.float32),
        "phi_b":   jnp.zeros((inter, 1), jnp.float32),
        "g_w":     s * jax.random.normal(ks[2], (inter, dim_past_ch), jnp.float32),
        "g_b":     jnp.zeros((inter, 1), jnp.float32),
        "w_w":     s * jax.random.normal(ks[3], (dim_curr_ch, inter), jnp.float32),
        "w_b":     jnp.zeros((dim_curr_ch, 1), jnp.float32),
    }


def init_network_params(key, non_local_params, dim_past_list, dim_curr, linear_dim):
    inter = non_local_params["inter_channels"]
    blocks = []
    for dim_past in dim_past_list:
        key, k1, k2 = jax.random.split(key, 3)
        blocks.append({
            # convBlock1_all: NONLocalBlock1D(params, dim_past, dim_past, linear_dim)
            "block1": _init_nonlocal_params(k1, dim_past, dim_past, inter),
            # convBlock2_all: NONLocalBlock1D(params, dim_curr, dim_past, linear_dim)
            "block2": _init_nonlocal_params(k2, dim_curr, dim_past, inter),
        })
    key, kl, kb = jax.random.split(key, 3)
    n = len(dim_past_list)
    head = {
        "lin_w": 0.1 * jax.random.normal(kl, (linear_dim, n * linear_dim), jnp.float32),
        "lin_b": 0.01 * jax.random.normal(kb, (1, linear_dim), jnp.float32),
        "ln_w":  jnp.ones((dim_curr, linear_dim), jnp.float32),
        "ln_b":  jnp.zeros((dim_curr, linear_dim), jnp.float32),
    }
    return {"blocks": blocks, "head": head}


# ----------------------------------------------------------------------------
# Pure-JAX reference (for verification)
# ----------------------------------------------------------------------------
def _nonlocal_ref(xp, xc, p):
    theta = jnp.einsum("ic,bcl->bil", p["theta_w"], xc) + p["theta_b"][None]
    phi   = jnp.einsum("ic,bcl->bil", p["phi_w"], xp) + p["phi_b"][None]
    g     = jnp.einsum("ic,bcl->bil", p["g_w"], xp) + p["g_b"][None]
    f = jnp.einsum("bil,bim->blm", theta, phi)
    a = jax.nn.softmax(f, axis=-1)
    y = jnp.einsum("blm,bim->bil", a, g)
    wy = jnp.einsum("ci,bil->bcl", p["w_w"], y) + p["w_b"][None]
    return jnp.maximum(wy + xc, 0.0)


def _forward_ref(params, x_past_all, x_curr):
    futures = []
    for i, blk in enumerate(params["blocks"]):
        xp = x_past_all[i]
        nle_past = _nonlocal_ref(xp, xp, blk["block1"])
        futures.append(_nonlocal_ref(nle_past, x_curr, blk["block2"]))
    comb = jnp.concatenate(futures, axis=2)
    y = jnp.einsum("bck,jk->bcj", comb, params["head"]["lin_w"]) + params["head"]["lin_b"][None]
    mu = jnp.mean(y, axis=(1, 2), keepdims=True)
    var = jnp.mean((y - mu) ** 2, axis=(1, 2), keepdims=True)
    yn = (y - mu) / jnp.sqrt(var + 1e-5) * params["head"]["ln_w"][None] + params["head"]["ln_b"][None]
    return jnp.maximum(yn, 0.0)


# ----------------------------------------------------------------------------
if __name__ == "__main__":
    # Small shapes consistent with the module's forward.  Cc * L = 128 -> the
    # fused output row is exactly one full lane width.
    B = 2
    dim_curr = 4
    dim_past_list = [4, 6]
    linear_dim = 32
    non_local_params = {"dropout_rate": 0.3, "inter_channels": 8}

    key = jax.random.PRNGKey(0)
    key, kp = jax.random.split(key)
    params = init_network_params(kp, non_local_params, dim_past_list, dim_curr, linear_dim)

    key, k1, k2, k3 = jax.random.split(key, 4)
    x_past_actual_all = [
        jax.random.normal(k1, (B, dim_past_list[0], linear_dim), jnp.float32),
        jax.random.normal(k2, (B, dim_past_list[1], linear_dim), jnp.float32),
    ]
    x_curr_actual = jax.random.normal(k3, (B, dim_curr, linear_dim), jnp.float32)

    fwd = jax.jit(functools.partial(network_in_network_forward, params))
    out = jax.block_until_ready(fwd(x_past_actual_all, x_curr_actual))

    ref = _forward_ref(params, x_past_actual_all, x_curr_actual)
    assert out.shape == (B, dim_curr, linear_dim)
    # Exact softmax denominator restored -> tight tolerance again.
    np.testing.assert_allclose(np.asarray(out), np.asarray(ref), rtol=1e-4, atol=1e-4)

    print("KERNEL_OK")
</pallas_src>

<mosaic_0001>
module attributes {stable_mosaic.version = 11 : i64} {
  func.func @kernel(%arg0: i32, %arg1: memref<1x4x32xf32, #tpu.memory_space<vmem>>, %arg2: memref<1x6x32xf32, #tpu.memory_space<vmem>>, %arg3: memref<1x4x32xf32, #tpu.memory_space<vmem>>, %arg4: memref<216x128xf32, #tpu.memory_space<vmem>>, %arg5: memref<1x1x128xf32, #tpu.memory_space<vmem>>) attributes {dimension_semantics = [#tpu.dimension_semantics<parallel>], iteration_bounds = array<i64: 2>, scalar_prefetch = 0 : i64, scratch_operands = 0 : i64, tpu.core_type = #tpu.core_type<tc>, window_params = [{transform_indices = @transform_0, window_bounds = array<i64: 1, 4, 32>}, {transform_indices = @transform_1, window_bounds = array<i64: 1, 6, 32>}, {transform_indices = @transform_2, window_bounds = array<i64: 1, 4, 32>}, {pipeline_mode = #tpu.pipeline_mode<synchronous>, transform_indices = @transform_3, window_bounds = array<i64: 216, 128>}, {transform_indices = @transform_4, window_bounds = array<i64: 1, 1, 128>}]} {
    %c0 = arith.constant 0 : index
    %c0_0 = arith.constant 0 : index
    %c0_1 = arith.constant 0 : index
    %0 = vector.load %arg3[%c0, %c0_0, %c0_1] : memref<1x4x32xf32, #tpu.memory_space<vmem>>, vector<1x4x32xf32>
    %1 = vector.shape_cast %0 : vector<1x4x32xf32> to vector<4x32xf32>
    %c0_2 = arith.constant 0 : index
    %c0_3 = arith.constant 0 : index
    %c0_4 = arith.constant 0 : index
    %2 = vector.load %arg1[%c0_2, %c0_3, %c0_4] : memref<1x4x32xf32, #tpu.memory_space<vmem>>, vector<1x4x32xf32>
    %3 = vector.shape_cast %2 : vector<1x4x32xf32> to vector<4x32xf32>
    %c0_5 = arith.constant 0 : index
    %c0_6 = arith.constant 0 : index
    %4 = vector.load %arg4[%c0_5, %c0_6] : memref<216x128xf32, #tpu.memory_space<vmem>>, vector<24x5xf32>
    %5 = vector.extract_strided_slice %4 {offsets = [0, 0], sizes = [24, 4], strides = [1, 1]} : vector<24x5xf32> to vector<24x4xf32>
    %cst = arith.constant dense<0.000000e+00> : vector<24x32xf32>
    %6 = tpu.matmul %5, %3, %cst {dimension_numbers = #tpu.dot_dimension_numbers<[1], [0], [0], [1], [0, 0, 1, 1], [], []>} : vector<24x4xf32>, vector<4x32xf32>, vector<24x32xf32> -> vector<24x32xf32>
    %7 = vector.extract_strided_slice %4 {offsets = [0, 4], sizes = [24, 1], strides = [1, 1]} : vector<24x5xf32> to vector<24x1xf32>
    %8 = vector.broadcast %7 : vector<24x1xf32> to vector<24x32xf32>
    %9 = arith.addf %6, %8 : vector<24x32xf32>
    %10 = vector.extract_strided_slice %9 {offsets = [0, 0], sizes = [8, 32], strides = [1, 1]} : vector<24x32xf32> to vector<8x32xf32>
    %11 = vector.extract_strided_slice %9 {offsets = [8, 0], sizes = [8, 32], strides = [1, 1]} : vector<24x32xf32> to vector<8x32xf32>
    %12 = vector.extract_strided_slice %9 {offsets = [16, 0], sizes = [8, 32], strides = [1, 1]} : vector<24x32xf32> to vector<8x32xf32>
    %cst_7 = arith.constant dense<0.000000e+00> : vector<32x32xf32>
    %13 = tpu.matmul %10, %11, %cst_7 {dimension_numbers = #tpu.dot_dimension_numbers<[0], [0], [1], [1], [0, 1, 1, 1], [], []>} : vector<8x32xf32>, vector<8x32xf32>, vector<32x32xf32> -> vector<32x32xf32>
    %cst_8 = arith.constant dense<0xFF800000> : vector<32xf32>
    %14 = vector.multi_reduction <maximumf>, %13, %cst_8 [1] : vector<32x32xf32> to vector<32xf32>
    %15 = vector.shape_cast %14 : vector<32xf32> to vector<32x1xf32>
    %16 = vector.broadcast %15 : vector<32x1xf32> to vector<32x32xf32>
    %17 = arith.subf %13, %16 : vector<32x32xf32>
    %18 = math.exp %17 : vector<32x32xf32>
    %cst_9 = arith.constant dense<0.000000e+00> : vector<32xf32>
    %19 = vector.multi_reduction <add>, %18, %cst_9 [1] : vector<32x32xf32> to vector<32xf32>
    %20 = vector.shape_cast %19 : vector<32xf32> to vector<32x1xf32>
    %21 = vector.broadcast %20 : vector<32x1xf32> to vector<32x32xf32>
    %22 = arith.divf %18, %21 : vector<32x32xf32>
    %cst_10 = arith.constant dense<0.000000e+00> : vector<32x8xf32>
    %23 = tpu.matmul %22, %12, %cst_10 {dimension_numbers = #tpu.dot_dimension_numbers<[1], [1], [0], [0], [0, 0, 1, 0], [], []>} : vector<32x32xf32>, vector<8x32xf32>, vector<32x8xf32> -> vector<32x8xf32>
    %c24 = arith.constant 24 : index
    %c0_11 = arith.constant 0 : index
    %24 = vector.load %arg4[%c24, %c0_11] : memref<216x128xf32, #tpu.memory_space<vmem>>, vector<4x9xf32>
    %25 = vector.extract_strided_slice %24 {offsets = [0, 0], sizes = [4, 8], strides = [1, 1]} : vector<4x9xf32> to vector<4x8xf32>
    %cst_12 = arith.constant dense<0.000000e+00> : vector<4x32xf32>
    %26 = tpu.matmul %25, %23, %cst_12 {dimension_numbers = #tpu.dot_dimension_numbers<[1], [1], [0], [0], [0, 0, 1, 0], [], []>} : vector<4x8xf32>, vector<32x8xf32>, vector<4x32xf32> -> vector<4x32xf32>
    %27 = vector.extract_strided_slice %24 {offsets = [0, 8], sizes = [4, 1], strides = [1, 1]} : vector<4x9xf32> to vector<4x1xf32>
    %28 = vector.broadcast %27 : vector<4x1xf32> to vector<4x32xf32>
    %29 = arith.addf %26, %28 : vector<4x32xf32>
    %30 = arith.addf %29, %3 : vector<4x32xf32>
    %cst_13 = arith.constant 0.000000e+00 : f32
    %31 = vector.broadcast %cst_13 : f32 to vector<4x32xf32>
    %32 = arith.maximumf %30, %31 : vector<4x32xf32>
    %c32 = arith.constant 32 : index
    %c0_14 = arith.constant 0 : index
    %33 = vector.load %arg4[%c32, %c0_14] : memref<216x128xf32, #tpu.memory_space<vmem>>, vector<8x5xf32>
    %34 = vector.extract_strided_slice %33 {offsets = [0, 0], sizes = [8, 4], strides = [1, 1]} : vector<8x5xf32> to vector<8x4xf32>
    %cst_15 = arith.constant dense<0.000000e+00> : vector<8x32xf32>
    %35 = tpu.matmul %34, %1, %cst_15 {dimension_numbers = #tpu.dot_dimension_numbers<[1], [0], [0], [1], [0, 0, 1, 1], [], []>} : vector<8x4xf32>, vector<4x32xf32>, vector<8x32xf32> -> vector<8x32xf32>
    %36 = vector.extract_strided_slice %33 {offsets = [0, 4], sizes = [8, 1], strides = [1, 1]} : vector<8x5xf32> to vector<8x1xf32>
    %37 = vector.broadcast %36 : vector<8x1xf32> to vector<8x32xf32>
    %38 = arith.addf %35, %37 : vector<8x32xf32>
    %c40 = arith.constant 40 : index
    %c0_16 = arith.constant 0 : index
    %39 = vector.load %arg4[%c40, %c0_16] : memref<216x128xf32, #tpu.memory_space<vmem>>, vector<16x5xf32>
    %40 = vector.extract_strided_slice %39 {offsets = [0, 0], sizes = [16, 4], strides = [1, 1]} : vector<16x5xf32> to vector<16x4xf32>
    %cst_17 = arith.constant dense<0.000000e+00> : vector<16x32xf32>
    %41 = tpu.matmul %40, %32, %cst_17 {dimension_numbers = #tpu.dot_dimension_numbers<[1], [0], [0], [1], [0, 0, 1, 1], [], []>} : vector<16x4xf32>, vector<4x32xf32>, vector<16x32xf32> -> vector<16x32xf32>
    %42 = vector.extract_strided_slice %39 {offsets = [0, 4], sizes = [16, 1], strides = [1, 1]} : vector<16x5xf32> to vector<16x1xf32>
    %43 = vector.broadcast %42 : vector<16x1xf32> to vector<16x32xf32>
    %44 = arith.addf %41, %43 : vector<16x32xf32>
    %45 = vector.extract_strided_slice %44 {offsets = [0, 0], sizes = [8, 32], strides = [1, 1]} : vector<16x32xf32> to vector<8x32xf32>
    %46 = vector.extract_strided_slice %44 {offsets = [8, 0], sizes = [8, 32], strides = [1, 1]} : vector<16x32xf32> to vector<8x32xf32>
    %cst_18 = arith.constant dense<0.000000e+00> : vector<32x32xf32>
    %47 = tpu.matmul %38, %45, %cst_18 {dimension_numbers = #tpu.dot_dimension_numbers<[0], [0], [1], [1], [0, 1, 1, 1], [], []>} : vector<8x32xf32>, vector<8x32xf32>, vector<32x32xf32> -> vector<32x32xf32>
    %cst_19 = arith.constant dense<0xFF800000> : vector<32xf32>
    %48 = vector.multi_reduction <maximumf>, %47, %cst_19 [1] : vector<32x32xf32> to vector<32xf32>
    %49 = vector.shape_cast %48 : vector<32xf32> to vector<32x1xf32>
    %50 = vector.broadcast %49 : vector<32x1xf32> to vector<32x32xf32>
    %51 = arith.subf %47, %50 : vector<32x32xf32>
    %52 = math.exp %51 : vector<32x32xf32>
    %cst_20 = arith.constant dense<0.000000e+00> : vector<32xf32>
    %53 = vector.multi_reduction <add>, %52, %cst_20 [1] : vector<32x32xf32> to vector<32xf32>
    %54 = vector.shape_cast %53 : vector<32xf32> to vector<32x1xf32>
    %55 = vector.broadcast %54 : vector<32x1xf32> to vector<32x32xf32>
    %56 = arith.divf %52, %55 : vector<32x32xf32>
    %cst_21 = arith.constant dense<0.000000e+00> : vector<32x8xf32>
    %57 = tpu.matmul %56, %46, %cst_21 {dimension_numbers = #tpu.dot_dimension_numbers<[1], [1], [0], [0], [0, 0, 1, 0], [], []>} : vector<32x32xf32>, vector<8x32xf32>, vector<32x8xf32> -> vector<32x8xf32>
    %c56 = arith.constant 56 : index
    %c0_22 = arith.constant 0 : index
    %58 = vector.load %arg4[%c56, %c0_22] : memref<216x128xf32, #tpu.memory_space<vmem>>, vector<4x9xf32>
    %59 = vector.extract_strided_slice %58 {offsets = [0, 0], sizes = [4, 8], strides = [1, 1]} : vector<4x9xf32> to vector<4x8xf32>
    %cst_23 = arith.constant dense<0.000000e+00> : vector<4x32xf32>
    %60 = tpu.matmul %59, %57, %cst_23 {dimension_numbers = #tpu.dot_dimension_numbers<[1], [1], [0], [0], [0, 0, 1, 0], [], []>} : vector<4x8xf32>, vector<32x8xf32>, vector<4x32xf32> -> vector<4x32xf32>
    %61 = vector.extract_strided_slice %58 {offsets = [0, 8], sizes = [4, 1], strides = [1, 1]} : vector<4x9xf32> to vector<4x1xf32>
    %62 = vector.broadcast %61 : vector<4x1xf32> to vector<4x32xf32>
    %63 = arith.addf %60, %62 : vector<4x32xf32>
    %64 = arith.addf %63, %1 : vector<4x32xf32>
    %cst_24 = arith.constant 0.000000e+00 : f32
    %65 = vector.broadcast %cst_24 : f32 to vector<4x32xf32>
    %66 = arith.maximumf %64, %65 : vector<4x32xf32>
    %c128 = arith.constant 128 : index
    %c0_25 = arith.constant 0 : index
    %67 = vector.load %arg4[%c128, %c0_25] : memref<216x128xf32, #tpu.memory_space<vmem>>, vector<32x32xf32>
    %cst_26 = arith.constant dense<0.000000e+00> : vector<4x32xf32>
    %68 = tpu.matmul %66, %67, %cst_26 {dimension_numbers = #tpu.dot_dimension_numbers<[1], [0], [0], [1], [0, 0, 1, 1], [], []>} : vector<4x32xf32>, vector<32x32xf32>, vector<4x32xf32> -> vector<4x32xf32>
    %c0_27 = arith.constant 0 : index
    %c0_28 = arith.constant 0 : index
    %c0_29 = arith.constant 0 : index
    %69 = vector.load %arg2[%c0_27, %c0_28, %c0_29] : memref<1x6x32xf32, #tpu.memory_space<vmem>>, vector<1x6x32xf32>
    %70 = vector.shape_cast %69 : vector<1x6x32xf32> to vector<6x32xf32>
    %c64 = arith.constant 64 : index
    %c0_30 = arith.constant 0 : index
    %71 = vector.load %arg4[%c64, %c0_30] : memref<216x128xf32, #tpu.memory_space<vmem>>, vector<24x7xf32>
    %72 = vector.extract_strided_slice %71 {offsets = [0, 0], sizes = [24, 6], strides = [1, 1]} : vector<24x7xf32> to vector<24x6xf32>
    %cst_31 = arith.constant dense<0.000000e+00> : vector<24x32xf32>
    %73 = tpu.matmul %72, %70, %cst_31 {dimension_numbers = #tpu.dot_dimension_numbers<[1], [0], [0], [1], [0, 0, 1, 1], [], []>} : vector<24x6xf32>, vector<6x32xf32>, vector<24x32xf32> -> vector<24x32xf32>
    %74 = vector.extract_strided_slice %71 {offsets = [0, 6], sizes = [24, 1], strides = [1, 1]} : vector<24x7xf32> to vector<24x1xf32>
    %75 = vector.broadcast %74 : vector<24x1xf32> to vector<24x32xf32>
    %76 = arith.addf %73, %75 : vector<24x32xf32>
    %77 = vector.extract_strided_slice %76 {offsets = [0, 0], sizes = [8, 32], strides = [1, 1]} : vector<24x32xf32> to vector<8x32xf32>
    %78 = vector.extract_strided_slice %76 {offsets = [8, 0], sizes = [8, 32], strides = [1, 1]} : vector<24x32xf32> to vector<8x32xf32>
    %79 = vector.extract_strided_slice %76 {offsets = [16, 0], sizes = [8, 32], strides = [1, 1]} : vector<24x32xf32> to vector<8x32xf32>
    %cst_32 = arith.constant dense<0.000000e+00> : vector<32x32xf32>
    %80 = tpu.matmul %77, %78, %cst_32 {dimension_numbers = #tpu.dot_dimension_numbers<[0], [0], [1], [1], [0, 1, 1, 1], [], []>} : vector<8x32xf32>, vector<8x32xf32>, vector<32x32xf32> -> vector<32x32xf32>
    %cst_33 = arith.constant dense<0xFF800000> : vector<32xf32>
    %81 = vector.multi_reduction <maximumf>, %80, %cst_33 [1] : vector<32x32xf32> to vector<32xf32>
    %82 = vector.shape_cast %81 : vector<32xf32> to vector<32x1xf32>
    %83 = vector.broadcast %82 : vector<32x1xf32> to vector<32x32xf32>
    %84 = arith.subf %80, %83 : vector<32x32xf32>
    %85 = math.exp %84 : vector<32x32xf32>
    %cst_34 = arith.constant dense<0.000000e+00> : vector<32xf32>
    %86 = vector.multi_reduction <add>, %85, %cst_34 [1] : vector<32x32xf32> to vector<32xf32>
    %87 = vector.shape_cast %86 : vector<32xf32> to vector<32x1xf32>
    %88 = vector.broadcast %87 : vector<32x1xf32> to vector<32x32xf32>
    %89 = arith.divf %85, %88 : vector<32x32xf32>
    %cst_35 = arith.constant dense<0.000000e+00> : vector<32x8xf32>
    %90 = tpu.matmul %89, %79, %cst_35 {dimension_numbers = #tpu.dot_dimension_numbers<[1], [1], [0], [0], [0, 0, 1, 0], [], []>} : vector<32x32xf32>, vector<8x32xf32>, vector<32x8xf32> -> vector<32x8xf32>
    %c88 = arith.constant 88 : index
    %c0_36 = arith.constant 0 : index
    %91 = vector.load %arg4[%c88, %c0_36] : memref<216x128xf32, #tpu.memory_space<vmem>>, vector<6x9xf32>
    %92 = vector.extract_strided_slice %91 {offsets = [0, 0], sizes = [6, 8], strides = [1, 1]} : vector<6x9xf32> to vector<6x8xf32>
    %cst_37 = arith.constant dense<0.000000e+00> : vector<6x32xf32>
    %93 = tpu.matmul %92, %90, %cst_37 {dimension_numbers = #tpu.dot_dimension_numbers<[1], [1], [0], [0], [0, 0, 1, 0], [], []>} : vector<6x8xf32>, vector<32x8xf32>, vector<6x32xf32> -> vector<6x32xf32>
    %94 = vector.extract_strided_slice %91 {offsets = [0, 8], sizes = [6, 1], strides = [1, 1]} : vector<6x9xf32> to vector<6x1xf32>
    %95 = vector.broadcast %94 : vector<6x1xf32> to vector<6x32xf32>
    %96 = arith.addf %93, %95 : vector<6x32xf32>
    %97 = arith.addf %96, %70 : vector<6x32xf32>
    %cst_38 = arith.constant 0.000000e+00 : f32
    %98 = vector.broadcast %cst_38 : f32 to vector<6x32xf32>
    %99 = arith.maximumf %97, %98 : vector<6x32xf32>
    %c96 = arith.constant 96 : index
    %c0_39 = arith.constant 0 : index
    %100 = vector.load %arg4[%c96, %c0_39] : memref<216x128xf32, #tpu.memory_space<vmem>>, vector<8x5xf32>
    %101 = vector.extract_strided_slice %100 {offsets = [0, 0], sizes = [8, 4], strides = [1, 1]} : vector<8x5xf32> to vector<8x4xf32>
    %cst_40 = arith.constant dense<0.000000e+00> : vector<8x32xf32>
    %102 = tpu.matmul %101, %1, %cst_40 {dimension_numbers = #tpu.dot_dimension_numbers<[1], [0], [0], [1], [0, 0, 1, 1], [], []>} : vector<8x4xf32>, vector<4x32xf32>, vector<8x32xf32> -> vector<8x32xf32>
    %103 = vector.extract_strided_slice %100 {offsets = [0, 4], sizes = [8, 1], strides = [1, 1]} : vector<8x5xf32> to vector<8x1xf32>
    %104 = vector.broadcast %103 : vector<8x1xf32> to vector<8x32xf32>
    %105 = arith.addf %102, %104 : vector<8x32xf32>
    %c104 = arith.constant 104 : index
    %c0_41 = arith.constant 0 : index
    %106 = vector.load %arg4[%c104, %c0_41] : memref<216x128xf32, #tpu.memory_space<vmem>>, vector<16x7xf32>
    %107 = vector.extract_strided_slice %106 {offsets = [0, 0], sizes = [16, 6], strides = [1, 1]} : vector<16x7xf32> to vector<16x6xf32>
    %cst_42 = arith.constant dense<0.000000e+00> : vector<16x32xf32>
    %108 = tpu.matmul %107, %99, %cst_42 {dimension_numbers = #tpu.dot_dimension_numbers<[1], [0], [0], [1], [0, 0, 1, 1], [], []>} : vector<16x6xf32>, vector<6x32xf32>, vector<16x32xf32> -> vector<16x32xf32>
    %109 = vector.extract_strided_slice %106 {offsets = [0, 6], sizes = [16, 1], strides = [1, 1]} : vector<16x7xf32> to vector<16x1xf32>
    %110 = vector.broadcast %109 : vector<16x1xf32> to vector<16x32xf32>
    %111 = arith.addf %108, %110 : vector<16x32xf32>
    %112 = vector.extract_strided_slice %111 {offsets = [0, 0], sizes = [8, 32], strides = [1, 1]} : vector<16x32xf32> to vector<8x32xf32>
    %113 = vector.extract_strided_slice %111 {offsets = [8, 0], sizes = [8, 32], strides = [1, 1]} : vector<16x32xf32> to vector<8x32xf32>
    %cst_43 = arith.constant dense<0.000000e+00> : vector<32x32xf32>
    %114 = tpu.matmul %105, %112, %cst_43 {dimension_numbers = #tpu.dot_dimension_numbers<[0], [0], [1], [1], [0, 1, 1, 1], [], []>} : vector<8x32xf32>, vector<8x32xf32>, vector<32x32xf32> -> vector<32x32xf32>
    %cst_44 = arith.constant dense<0xFF800000> : vector<32xf32>
    %115 = vector.multi_reduction <maximumf>, %114, %cst_44 [1] : vector<32x32xf32> to vector<32xf32>
    %116 = vector.shape_cast %115 : vector<32xf32> to vector<32x1xf32>
    %117 = vector.broadcast %116 : vector<32x1xf32> to vector<32x32xf32>
    %118 = arith.subf %114, %117 : vector<32x32xf32>
    %119 = math.exp %118 : vector<32x32xf32>
    %cst_45 = arith.constant dense<0.000000e+00> : vector<32xf32>
    %120 = vector.multi_reduction <add>, %119, %cst_45 [1] : vector<32x32xf32> to vector<32xf32>
    %121 = vector.shape_cast %120 : vector<32xf32> to vector<32x1xf32>
    %122 = vector.broadcast %121 : vector<32x1xf32> to vector<32x32xf32>
    %123 = arith.divf %119, %122 : vector<32x32xf32>
    %cst_46 = arith.constant dense<0.000000e+00> : vector<32x8xf32>
    %124 = tpu.matmul %123, %113, %cst_46 {dimension_numbers = #tpu.dot_dimension_numbers<[1], [1], [0], [0], [0, 0, 1, 0], [], []>} : vector<32x32xf32>, vector<8x32xf32>, vector<32x8xf32> -> vector<32x8xf32>
    %c120 = arith.constant 120 : index
    %c0_47 = arith.constant 0 : index
    %125 = vector.load %arg4[%c120, %c0_47] : memref<216x128xf32, #tpu.memory_space<vmem>>, vector<4x9xf32>
    %126 = vector.extract_strided_slice %125 {offsets = [0, 0], sizes = [4, 8], strides = [1, 1]} : vector<4x9xf32> to vector<4x8xf32>
    %cst_48 = arith.constant dense<0.000000e+00> : vector<4x32xf32>
    %127 = tpu.matmul %126, %124, %cst_48 {dimension_numbers = #tpu.dot_dimension_numbers<[1], [1], [0], [0], [0, 0, 1, 0], [], []>} : vector<4x8xf32>, vector<32x8xf32>, vector<4x32xf32> -> vector<4x32xf32>
    %128 = vector.extract_strided_slice %125 {offsets = [0, 8], sizes = [4, 1], strides = [1, 1]} : vector<4x9xf32> to vector<4x1xf32>
    %129 = vector.broadcast %128 : vector<4x1xf32> to vector<4x32xf32>
    %130 = arith.addf %127, %129 : vector<4x32xf32>
    %131 = arith.addf %130, %1 : vector<4x32xf32>
    %cst_49 = arith.constant 0.000000e+00 : f32
    %132 = vector.broadcast %cst_49 : f32 to vector<4x32xf32>
    %133 = arith.maximumf %131, %132 : vector<4x32xf32>
    %c160 = arith.constant 160 : index
    %c0_50 = arith.constant 0 : index
    %134 = vector.load %arg4[%c160, %c0_50] : memref<216x128xf32, #tpu.memory_space<vmem>>, vector<32x32xf32>
    %cst_51 = arith.constant dense<0.000000e+00> : vector<4x32xf32>
    %135 = tpu.matmul %133, %134, %cst_51 {dimension_numbers = #tpu.dot_dimension_numbers<[1], [0], [0], [1], [0, 0, 1, 1], [], []>} : vector<4x32xf32>, vector<32x32xf32>, vector<4x32xf32> -> vector<4x32xf32>
    %136 = arith.addf %68, %135 : vector<4x32xf32>
    %c192 = arith.constant 192 : index
    %c0_52 = arith.constant 0 : index
    %137 = vector.load %arg4[%c192, %c0_52] : memref<216x128xf32, #tpu.memory_space<vmem>>, vector<1x32xf32>
    %138 = vector.broadcast %137 : vector<1x32xf32> to vector<4x32xf32>
    %139 = arith.addf %136, %138 : vector<4x32xf32>
    %140 = vector.shape_cast %139 : vector<4x32xf32> to vector<1x4x32xf32>
    %cst_53 = arith.constant dense<0.000000e+00> : vector<1xf32>
    %141 = vector.multi_reduction <add>, %140, %cst_53 [1, 2] : vector<1x4x32xf32> to vector<1xf32>
    %142 = vector.shape_cast %141 : vector<1xf32> to vector<1x1x1xf32>
    %143 = vector.extract %142[0, 0, 0] : f32 from vector<1x1x1xf32>
    %144 = vector.broadcast %143 : f32 to vector<1x1xf32>
    %cst_54 = arith.constant 1.280000e+02 : f32
    %145 = vector.broadcast %cst_54 : f32 to vector<1x1xf32>
    %146 = arith.divf %144, %145 : vector<1x1xf32>
    %147 = vector.broadcast %146 : vector<1x1xf32> to vector<4x32xf32>
    %148 = arith.subf %139, %147 : vector<4x32xf32>
    %149 = arith.mulf %148, %148 : vector<4x32xf32>
    %150 = vector.shape_cast %149 : vector<4x32xf32> to vector<1x4x32xf32>
    %cst_55 = arith.constant dense<0.000000e+00> : vector<1xf32>
    %151 = vector.multi_reduction <add>, %150, %cst_55 [1, 2] : vector<1x4x32xf32> to vector<1xf32>
    %152 = vector.shape_cast %151 : vector<1xf32> to vector<1x1x1xf32>
    %153 = vector.extract %152[0, 0, 0] : f32 from vector<1x1x1xf32>
    %154 = vector.broadcast %153 : f32 to vector<1x1xf32>
    %cst_56 = arith.constant 1.280000e+02 : f32
    %155 = vector.broadcast %cst_56 : f32 to vector<1x1xf32>
    %156 = arith.divf %154, %155 : vector<1x1xf32>
    %157 = vector.broadcast %146 : vector<1x1xf32> to vector<4x32xf32>
    %158 = arith.subf %139, %157 : vector<4x32xf32>
    %cst_57 = arith.constant 9.99999974E-6 : f32
    %159 = vector.broadcast %cst_57 : f32 to vector<1x1xf32>
    %160 = arith.addf %156, %159 : vector<1x1xf32>
    %161 = math.rsqrt %160 : vector<1x1xf32>
    %162 = vector.broadcast %161 : vector<1x1xf32> to vector<4x32xf32>
    %163 = arith.mulf %158, %162 : vector<4x32xf32>
    %c200 = arith.constant 200 : index
    %c0_58 = arith.constant 0 : index
    %164 = vector.load %arg4[%c200, %c0_58] : memref<216x128xf32, #tpu.memory_space<vmem>>, vector<4x32xf32>
    %165 = arith.mulf %163, %164 : vector<4x32xf32>
    %c208 = arith.constant 208 : index
    %c0_59 = arith.constant 0 : index
    %166 = vector.load %arg4[%c208, %c0_59] : memref<216x128xf32, #tpu.memory_space<vmem>>, vector<4x32xf32>
    %167 = arith.addf %165, %166 : vector<4x32xf32>
    %cst_60 = arith.constant 0.000000e+00 : f32
    %168 = vector.broadcast %cst_60 : f32 to vector<4x32xf32>
    %169 = arith.maximumf %167, %168 : vector<4x32xf32>
    %170 = vector.extract_strided_slice %169 {offsets = [0, 0], sizes = [1, 32], strides = [1, 1]} : vector<4x32xf32> to vector<1x32xf32>
    %171 = vector.extract_strided_slice %169 {offsets = [1, 0], sizes = [1, 32], strides = [1, 1]} : vector<4x32xf32> to vector<1x32xf32>
    %172 = vector.extract_strided_slice %169 {offsets = [2, 0], sizes = [1, 32], strides = [1, 1]} : vector<4x32xf32> to vector<1x32xf32>
    %173 = vector.extract_strided_slice %169 {offsets = [3, 0], sizes = [1, 32], strides = [1, 1]} : vector<4x32xf32> to vector<1x32xf32>
    %174 = tpu.concatenate %170, %171, %172, %173 in 1 : vector<1x32xf32>, vector<1x32xf32>, vector<1x32xf32>, vector<1x32xf32> -> vector<1x128xf32>
    %c0_61 = arith.constant 0 : index
    %c0_62 = arith.constant 0 : index
    %c0_63 = arith.constant 0 : index
    %175 = vector.load %arg5[%c0_61, %c0_62, %c0_63] : memref<1x1x128xf32, #tpu.memory_space<vmem>>, vector<1x1x128xf32>
    %176 = vector.shape_cast %175 : vector<1x1x128xf32> to vector<1x128xf32>
    %177 = vector.shape_cast %174 : vector<1x128xf32> to vector<1x1x128xf32>
    tpu.vector_store %arg5[%c0_61, %c0_62, %c0_63], %177 {strides = array<i32>} : memref<1x1x128xf32, #tpu.memory_space<vmem>>, vector<1x1x128xf32>,
    return
  }
  func.func @transform_0(%arg0: i32) -> (i32, i32, i32) {
    %c0_i32 = arith.constant 0 : i32
    %c0_i32_0 = arith.constant 0 : i32
    %c0_i32_1 = arith.constant 0 : i32
    return %arg0, %c0_i32, %c0_i32_0 : i32, i32, i32
  }
  func.func @transform_1(%arg0: i32) -> (i32, i32, i32) {
    %c0_i32 = arith.constant 0 : i32
    %c0_i32_0 = arith.constant 0 : i32
    %c0_i32_1 = arith.constant 0 : i32
    return %arg0, %c0_i32, %c0_i32_0 : i32, i32, i32
  }
  func.func @transform_2(%arg0: i32) -> (i32, i32, i32) {
    %c0_i32 = arith.constant 0 : i32
    %c0_i32_0 = arith.constant 0 : i32
    %c0_i32_1 = arith.constant 0 : i32
    return %arg0, %c0_i32, %c0_i32_0 : i32, i32, i32
  }
  func.func @transform_3(%arg0: i32) -> (i32, i32) {
    %c0_i32 = arith.constant 0 : i32
    %c0_i32_0 = arith.constant 0 : i32
    %c0_i32_1 = arith.constant 0 : i32
    return %c0_i32, %c0_i32_0 : i32, i32
  }
  func.func @transform_4(%arg0: i32) -> (i32, i32, i32) {
    %c0_i32 = arith.constant 0 : i32
    %c0_i32_0 = arith.constant 0 : i32
    %c0_i32_1 = arith.constant 0 : i32
    return %arg0, %c0_i32, %c0_i32_0 : i32, i32, i32
  }
}

</mosaic_0001>

<bundles_post_ra>
// kernel: network_in_network_forward.1
= control target key start
LH: loop header
LB: loop body
LE: loop exit
PB: predicated region body
PF: predicated region fallthrough
CT: control target
= control target key end

     0   :  { %s3070_s15 = smov 0   ;;  %s3383_s0 = inlined_call_operand.vmem [shape: f32[2,4,32], index: 0, kind: input, shape index: {}]   ;;  %s3384_s1 = inlined_call_operand.vmem [shape: f32[2,6,32], index: 1, kind: input, shape index: {}]   ;;  %s3385_s2 = inlined_call_operand.vmem [shape: f32[2,4,32], index: 2, kind: input, shape index: {}]   ;;  %s3386_s3 = inlined_call_operand.vmem [shape: f32[216,128], index: 3, kind: input, shape index: {}]   ;;  %s3387_s4 = inlined_call_operand.vmem [shape: f32[2,1,128], index: 4, kind: output, shape index: {}]  }
   0x1 LB: > { %s2541_s16 = sadd.s32 4294967295, %s3034_s15   ;;  %p2545_p0 = scmp.ge.s32.totalorder %s3034_s15, 1  ;;  %s3034_s15 = sphi %s3070_s15, %s14_s15  }
   0x2   : > { %p179_p1 = scmp.lt.s32.totalorder %s3034_s15, 3 }
   0x4   : > { %p180_p2 = pnand %p2545_p0, %p179_p1 }
   0x5   : > { %p210_p3 = scmp.lt.s32.totalorder (!%p180_p2), %s2541_s16, 1  ;;  %v3036_v0 = vmov (!%p180_p2), 0.0   ;;  %vm3037_vm0 = vmmov (!%p180_p2), 0   ;;  %v227_v1 = vld [vmem:[%s3386_s3] sm:$0xff] (!%p180_p2)  ;;  %v3038_v2 = vmov (!%p180_p2), 4   ;;  %vm252_vm1 = vcmask (!%p180_p2), 1043456  }
   0x6   : > { %183 = sbr.rel (%p180_p2) target bundleno = 5433 (0x1539), region = 36  ;;  %2716 = vmatprep.subr.mxu0 (!%p180_p2), %v3036_v0  ;;  %2718 = vmatprep.mubr.msk.f32.mxu0 (!%p180_p2), %vm3037_vm0, %v3036_v0  ;;  %vm245_vm2 = vcmask (!%p180_p2), 31744   ;;  %v228_v4 = vld [vmem:[%s3386_s3 + $0x8] sm:$0xff] (!%p180_p2)  ;;  %vm368_vm3 = vcmask (!%p180_p2), 64512   ;;  %v229_v17 = vld [vmem:[%s3386_s3 + $0x10] sm:$0xff] (!%p180_p2)  ;;  %vm466_vm4 = vcmask (!%p180_p2), 261120  }
   0x7   : > { %2953 = vset.pattern.permute.xlu0 (!%p180_p2), %v3038_v2  ;;  %v3039_v63 = vmov (!%p180_p2), 0.0|0.0   ;;  %vm3157_vm5 = vmpackc.low (!%p180_p2), %vm368_vm3, %vm368_vm3  ;;  %vm1273_vm6 = vcmask (!%p180_p2), 1045504   ;;  %vm1266_vm7 = vcmask (!%p180_p2), 48128   ;;  %vm2415_vm8 = vcmask (!%p180_p2), 257024   ;;  %s3042_s10 = smov (!%p180_p2), 64   ;;  %s3043_s11 = smov (!%p180_p2), 32  }
   0x8   : > { %232 = vperm.xlu0 (!%p180_p2), %2953, %v227_v1   ;;  %s3044_s12 = smov (!%p180_p2), 96   ;;  %vm2465_vm9 = vcmask (!%p180_p2), 523264   ;;  %vm2467_vm10 = vcmask (!%p180_p2), 785408  }
   0xc   : > { %237 = vperm.xlu0 (!%p180_p2), %2953, %v228_v4  }
   0xd   : > { %s3391_s16 = smov (!%p210_p3, %s2541_s16), 1 }
   0xe   : > { %s2546_s19 = sshll.u32 %s3391_s16, 2  ;;  %s2547_s18 = sshll.u32 %s3391_s16, 3 }
   0xf   : > { %s213_s22 = scalar_lea.vmem %s3383_s0, %s2546_s19  ;;  %s221_s29 = scalar_lea.vmem %s3385_s2, %s2546_s19 }
  0x10   : > { %v3093_v3 = vld [vmem:[%s213_s22] sm:$0xf]  ;;  %s217_s21 = scalar_lea.vmem %s3384_s1, %s2547_s18  ;;  %s224_s17 = scalar_lea.vmem %s3387_s4, %s3391_s16 }
  0x11   : > { %2717 = vmatpush3.msk.msra.mxu0 %vm252_vm1, %v3093_v3  ;;  %v3132_v58 = vld [vmem:[%s221_s29] sm:$0xf] }
  0x12   : > { %2719 = vmatmul.mubr.msk.f32.vlgmr.msra.gmra.mrb[0].mxu0 %vm245_vm2, %v227_v1  ;;  %2888 = vmatprep.subr.bf16.mxu0 %v3039_v63  ;;  %v703_v1 = vld [vmem:[%s3386_s3 + $0x20] sm:$0xff] }
  0x13   : > { %2721 = vmatprep.mubr.msk.f32.mxu0 %vm3037_vm0, %v3036_v0 }
  0x16   : > { %2722 = vmatmul.mubr.msk.f32.gmra.mrb[2].mxu0 %vm245_vm2, %v228_v4  ;;  %v611_v4 = vld [vmem:[%s3386_s3 + $0x18] sm:$0xf] }
  0x17   : > { %2724 = vmatprep.mubr.msk.f32.mxu0 %vm3037_vm0, %v3036_v0 }
  0x1a   : > { %2725 = vmatmul.mubr.msk.f32.gmra.mrb[4].mxu0 %vm245_vm2, %v229_v17 }
  0x1b   : > { %2751 = vmatprep.mubr.msk.f32.mxu0 %vm3037_vm0, %v3036_v0 }
  0x87   : > { %v233_v5 = vpop.permute.xlu0 %232 }
  0x8b   : > { %v238_v9 = vpop.permute.xlu0 %237 }
  0xe5   : > { %v322_v6 = vpop.f32.mrb[0].mxu0 }
  0xe6   : > { %v2720_v7 = vpop.f32.mrb[1].mxu0  ;;  %v323_v8 = vadd.f32 %v322_v6, %v233_v5  ;;  %v3040_v5 = vmov 8   ;;  %v784_v6 = vld [vmem:[%s3386_s3 + $0x28] sm:$0xff] }
  0xe8   : > { %336 = vxpose.xlu1.b32.start.end [1/1] (short) (narrow) %v323_v8, 32 }
  0xe9   : > { %v327_v10 = vpop.f32.mrb[2].mxu0 }
  0xea   : > { %v328_v11 = vadd.f32 %v327_v10, %v238_v9  ;;  %v2723_v12 = vpop.f32.mrb[3].mxu0  ;;  %v1243_v9 = vld [vmem:[%s3386_s3 + $0x80] sm:$0xff] }
  0xec   : > { %2727 = vmatprep.subr.mxu1 %v328_v11 }
  0xed   : > { %2728 = vmatpush3.msra.mxu1 %v328_v11  ;;  %v332_v46 = vpop.f32.mrb[4].mxu0 }
  0xee   : > { %v2726_v47 = vpop.f32.mrb[5].mxu0 }
 0x106   : > { %2954 = vset.pattern.permute.xlu1 %v3040_v5 }
 0x168   : > { %v352_v13 = vpop.trf.xlu1 }
 0x169   : > { %2729 = vmatprep.mubr.msk.f32.mxu1 %vm368_vm3, %v352_v13 }
 0x16c   : > { %v353_v14 = vpop.trf.xlu1 }
 0x16d   : > { %2730 = vmatmul.mubr.msk.f32.vlgmr.msra.gmra.mrb[0].mxu1 %vm368_vm3, %v353_v14 }
 0x170   : > { %v354_v15 = vpop.trf.xlu1 }
 0x171   : > { %2732 = vmatprep.mubr.msk.f32.mxu1 %vm368_vm3, %v354_v15 }
 0x174   : > { %v355_v16 = vpop.trf.xlu1 }
 0x175   : > { %2733 = vmatmul.mubr.msk.f32.gmra.mrb[2].mxu1 %vm368_vm3, %v355_v16 }
 0x240   : > { %v2731_v18 = vpop.f32.mrb[0].mxu1 }
 0x241   : > { %v447_v19 = vpop.f32.mrb[1].mxu1  ;;  %v470_v20 = vsel %vm466_vm4, %v2731_v18, -inf }
 0x242   : > { %471 = vmax.xlane.f32.xlu0 %v470_v20  ;;  %v467_v21 = vsel %vm466_vm4, %v447_v19, -inf }
 0x243   : > { %468 = vmax.xlane.f32.xlu1 %v467_v21 }
 0x248   : > { %v2734_v22 = vpop.f32.mrb[2].mxu1 }
 0x249   : > { %v457_v23 = vpop.f32.mrb[3].mxu1  ;;  %v476_v25 = vsel %vm466_vm4, %v2734_v22, -inf }
 0x24a   : > { %v473_v24 = vsel %vm466_vm4, %v457_v23, -inf }
 0x24b   : > { %474 = vmax.xlane.f32.xlu0 %v473_v24  ;;  %v785_v24 = vld [vmem:[%s3386_s3 + $0x30] sm:$0xff] }
 0x24f   : > { %477 = vmax.xlane.f32.xlu0 %v476_v25 }
 0x2cf   : > { %v472_v26 = vpop.xlane.xlu0 %471 }
 0x2d0   : > { %v480_v27 = vsub.f32 %v2731_v18, %v472_v26  ;;  %v469_v28 = vpop.xlane.xlu1 %468 }
 0x2d1   : > { %v479_v29 = vsub.f32 %v447_v19, %v469_v28 }
 0x2d2   : > { %v485_v30 = vmul.f32 1.442695, %v480_v27 }
 0x2d3   : > { %v483_v31 = vmul.f32 1.442695, %v479_v29 }
 0x2d4   : > { %2962 = vpow2.f32 %v485_v30 }
 0x2d5   : > { %2964 = vpow2.f32 %v483_v31 }
 0x2d8   : > { %v475_v32 = vpop.xlane.xlu0 %474 }
 0x2d9   : > { %v481_v33 = vsub.f32 %v457_v23, %v475_v32 }
 0x2db   : > { %v487_v34 = vmul.f32 1.442695, %v481_v33 }
 0x2dc   : > { %v478_v35 = vpop.xlane.xlu0 %477 }
 0x2dd   : > { %2966 = vpow2.f32 %v487_v34  ;;  %v482_v36 = vsub.f32 %v2734_v22, %v478_v35 }
 0x2de   : > { %v2963_v37 = vpop.eup %2962 }
 0x2df   : > { %v489_v38 = vmul.f32 1.442695, %v482_v36  ;;  %v494_v39 = vsel %vm466_vm4, %v2963_v37, 0.0  ;;  %v2965_v40 = vpop.eup %2964 }
 0x2e0   : > { %495 = vadd.xlane.f32.xlu0 %v494_v39  ;;  %v491_v41 = vsel %vm466_vm4, %v2965_v40, 0.0 }
 0x2e1   : > { %2968 = vpow2.f32 %v489_v38 }
 0x2e4   : > { %492 = vadd.xlane.f32.xlu0 %v491_v41 }
 0x2e7   : > { %v2967_v42 = vpop.eup %2966 }
 0x2e8   : > { %v497_v43 = vsel %vm466_vm4, %v2967_v42, 0.0 }
 0x2e9   : > { %498 = vadd.xlane.f32.xlu0 %v497_v43 }
 0x2eb   : > { %v2969_v44 = vpop.eup %2968 }
 0x2ec   : > { %v500_v45 = vsel %vm466_vm4, %v2969_v44, 0.0 }
 0x2ed   : > { %501 = vadd.xlane.f32.xlu1 %v500_v45 }
 0x2fe   : > { %614 = vperm.xlu1 %2954, %v611_v4  }
 0x2ff   : > { %242 = vperm.xlu0 %2953, %v229_v17  }
 0x302   : > { %2955 = vset.pattern.permute.xlu1 %v3038_v2 }
 0x303   : > { %706 = vperm.xlu1 %2955, %v703_v1  }
 0x307   : > { %788 = vperm.xlu1 %2955, %v784_v6  }
 0x36d   : > { %v496_v48 = vpop.xlane.xlu0 %495 }
 0x371   : > { %v493_v49 = vpop.xlane.xlu0 %492 }
 0x372   : > { %2970 = vrcp.f32 %v493_v49 }
 0x373   : > { %2972 = vrcp.f32 %v496_v48 }
 0x376   : > { %v499_v50 = vpop.xlane.xlu0 %498 }
 0x377   : > { %2974 = vrcp.f32 %v499_v50 }
 0x37a   : > { %v502_v51 = vpop.xlane.xlu1 %501 }
 0x37b   : > { %2976 = vrcp.f32 %v502_v51 }
 0x37c   : > { %v2971_v52 = vpop.eup %2970 }
 0x37d   : > { %v504_v53 = vmul.f32 %v2971_v52, %v2965_v40  ;;  %v2973_v56 = vpop.eup %2972 }
 0x37e   : > { %v243_v54 = vpop.permute.xlu0 %242  ;;  %v506_v59 = vmul.f32 %v2973_v56, %v2963_v37  ;;  %v615_v14 = vpop.permute.xlu1 %614 }
 0x37f   : > { %v333_v55 = vadd.f32 %v332_v46, %v243_v54  ;;  %2737 = vmatprep.mubr.msk.f32.mxu1 %vm466_vm4, %v504_v53 }
 0x381   : > { %v2975_v57 = vpop.eup %2974  ;;  %2735 = vmatprep.subr.msk.mxu1 %vm466_vm4, %v333_v55 }
 0x382   : > { %2736 = vmatpush3.xpose.msk.msra.mxu1 %vm466_vm4, %v333_v55  ;;  %v508_v60 = vmul.f32 %v2975_v57, %v2967_v42  ;;  %v707_v15 = vpop.permute.xlu1 %706 }
 0x383   : > { %2754 = vmatprep.subr.mxu1 %v3036_v0 }
 0x385   : > { %v2977_v61 = vpop.eup %2976  ;;  %2738 = vmatmul.mubr.msk.f32.vlgmr.msra.gmra.mrb[4].mxu1 %vm466_vm4, %v506_v59 }
 0x386   : > { %2740 = vmatprep.mubr.msk.f32.mxu1 %vm466_vm4, %v508_v60  ;;  %v510_v62 = vmul.f32 %v2977_v61, %v2969_v44  ;;  %2755 = vmatpush3.msk.msra.mxu1 %vm252_vm1, %v3132_v58  ;;  %v789_v27 = vpop.permute.xlu1 %788  ;;  %v1248_v61 = vld [vmem:[%s3386_s3 + $0x40] sm:$0xff] }
 0x389   : > { %2741 = vmatmul.mubr.msk.f32.gmra.mrb[6].mxu1 %vm466_vm4, %v510_v62  ;;  %v3041_v62 = vmov 6  }
 0x38a   : > { %2756 = vmatprep.mubr.msk.f32.mxu1 %vm3037_vm0, %v3036_v0 }
 0x38d   : > { %2757 = vmatmul.mubr.msk.f32.vlgmr.msra.gmra.mrb[8].mxu1 %vm245_vm2, %v703_v1  ;;  %v1249_v1 = vld [vmem:[%s3386_s3 + $0x48] sm:$0xff] }
 0x458   : > { %v2739_v7 = vpop.f32.mrb[4].mxu1 }
 0x459   : > { %v592_v8 = vpop.f32.mrb[5].mxu1 }
 0x45a   : > { %v2889_v10 = vpack.c.bf16 %v2739_v7, %v592_v8 }
 0x45c   : > { %v2742_v11 = vpop.f32.mrb[6].mxu1  ;;  %2891 = vmatpush3.bf16.xpose.msk.msra.mxu0 %vm3157_vm5, %v2889_v10 }
 0x45d   : > { %v602_v12 = vpop.f32.mrb[7].mxu1  ;;  %2892 = vmatprep.subr.bf16.mxu0 %v3039_v63 }
 0x45e   : > { %v2893_v13 = vpack.c.bf16 %v2742_v11, %v602_v12 }
 0x460   : > { %v780_v16 = vpop.f32.mrb[8].mxu1 }
 0x461   : > { %v781_v17 = vadd.f32 %v780_v16, %v707_v15  ;;  %v2758_v18 = vpop.f32.mrb[9].mxu1  ;;  %v3208_v16 = vld [vmem:[%s217_s21] sm:$0x3f] }
 0x463   : > { %878 = vxpose.xlu0.b32.start.end [1/1] (short) (narrow) %v781_v17, 32 }
 0x464   : > { %2895 = vmatpush3.bf16.xpose.msk.msra.mxu0 %vm3157_vm5, %v2893_v13 }
 0x46b   : > { %2752 = vmatmul.mubr.msk.f32.vlgmr.msra.gmra.mrb[6].mxu0 %vm368_vm3, %v611_v4 }
 0x46c   : > { %2761 = vmatprep.mubr.msk.f32.mxu0 %vm245_vm2, %v784_v6 }
 0x4e3   : > { %v894_v25 = vpop.trf.xlu0 }
 0x4e4   : > { %2766 = vmatprep.mubr.msk.f32.mxu1 %vm368_vm3, %v894_v25 }
 0x4e7   : > { %v895_v26 = vpop.trf.xlu0 }
 0x53e   : > { %v697_v19 = vpop.f32.mrb[6].mxu0 }
 0x53f   : > { %v698_v20 = vadd.f32 %v697_v19, %v615_v14  ;;  %v2753_v21 = vpop.f32.mrb[7].mxu0 }
 0x541   : > { %v701_v22 = vadd.f32 %v698_v20, %v3093_v3  ;;  %v896_v3 = vpop.trf.xlu0 }
 0x543   : > { %v702_v23 = vmax.f32 %v701_v22, 0.0 }
 0x545   : > { %2759 = vmatprep.subr.msk.mxu0 %vm252_vm1, %v702_v23  ;;  %v897_v31 = vpop.trf.xlu0 }
 0x546   : > { %2760 = vmatpush3.msk.msra.mxu0 %vm252_vm1, %v702_v23 }
 0x547   : > { %2762 = vmatmul.mubr.msk.f32.vlgmr.msra.gmra.mrb[8].mxu0 %vm245_vm2, %v785_v24 }
 0x61a   : > { %v3176_v28 = vpop.f32.mrb[8].mxu0 }
 0x61b   : > { %v869_v29 = vpop.f32.mrb[9].mxu0 }
 0x61c   : > { %v870_v30 = vadd.f32 %v869_v29, %v789_v27 }
 0x61e   : > { %2764 = vmatprep.subr.mxu1 %v870_v30 }
 0x61f   : > { %2765 = vmatpush3.msra.mxu1 %v870_v30 }
 0x620   : > { %2767 = vmatmul.mubr.msk.f32.vlgmr.msra.gmra.mrb[10].mxu1 %vm368_vm3, %v895_v26  ;;  %2896 = vmatprep.subr.bf16.mxu1 %v3039_v63 }
 0x621   : > { %2769 = vmatprep.mubr.msk.f32.mxu1 %vm368_vm3, %v896_v3 }
 0x624   : > { %2770 = vmatmul.mubr.msk.f32.gmra.mrb[12].mxu1 %vm368_vm3, %v897_v31 }
 0x625   : > { %2788 = vmatprep.mubr.msk.f32.mxu1 %vm3037_vm0, %v3036_v0 }
 0x6f3   : > { %v2768_v32 = vpop.f32.mrb[10].mxu1 }
 0x6f4   : > { %v988_v33 = vpop.f32.mrb[11].mxu1  ;;  %v1010_v34 = vsel %vm466_vm4, %v2768_v32, -inf }
 0x6f5   : > { %1011 = vmax.xlane.f32.xlu0 %v1010_v34  ;;  %v1007_v35 = vsel %vm466_vm4, %v988_v33, -inf  ;;  %v3231_v34 = vld [vmem:[%s3386_s3 + $0x38] sm:$0xf] }
 0x6f6   : > { %1008 = vmax.xlane.f32.xlu1 %v1007_v35 }
 0x6f7   : > { %v2771_v36 = vpop.f32.mrb[12].mxu1 }
 0x6f8   : > { %v998_v37 = vpop.f32.mrb[13].mxu1  ;;  %v1016_v39 = vsel %vm466_vm4, %v2771_v36, -inf }
 0x6f9   : > { %v1013_v38 = vsel %vm466_vm4, %v998_v37, -inf }
 0x6fa   : > { %1014 = vmax.xlane.f32.xlu1 %v1013_v38 }
 0x6fe   : > { %1017 = vmax.xlane.f32.xlu1 %v1016_v39 }
 0x782   : > { %v1012_v40 = vpop.xlane.xlu0 %1011 }
 0x783   : > { %v1020_v41 = vsub.f32 %v2768_v32, %v1012_v40  ;;  %v1009_v42 = vpop.xlane.xlu1 %1008 }
 0x784   : > { %v1019_v43 = vsub.f32 %v988_v33, %v1009_v42 }
 0x785   : > { %v1025_v44 = vmul.f32 1.442695, %v1020_v41  ;;  %v1250_v41 = vld [vmem:[%s3386_s3 + $0x50] sm:$0xff] }
 0x786   : > { %v1023_v45 = vmul.f32 1.442695, %v1019_v43 }
 0x787   : > { %2978 = vpow2.f32 %v1025_v44  ;;  %v1015_v46 = vpop.xlane.xlu1 %1014 }
 0x788   : > { %2980 = vpow2.f32 %v1023_v45  ;;  %v1021_v47 = vsub.f32 %v998_v37, %v1015_v46 }
 0x78a   : > { %v1027_v50 = vmul.f32 1.442695, %v1021_v47 }
 0x78b   : > { %v1018_v48 = vpop.xlane.xlu1 %1017 }
 0x78c   : > { %v1022_v49 = vsub.f32 %v2771_v36, %v1018_v48 }
 0x78e   : > { %v1029_v51 = vmul.f32 1.442695, %v1022_v49 }
 0x790   : > { %2982 = vpow2.f32 %v1029_v51 }
 0x791   : > { %v2979_v52 = vpop.eup %2978  ;;  %2984 = vpow2.f32 %v1027_v50 }
 0x792   : > { %v1034_v53 = vsel %vm466_vm4, %v2979_v52, 0.0  ;;  %v2981_v54 = vpop.eup %2980 }
 0x793   : > { %1035 = vadd.xlane.f32.xlu1 %v1034_v53  ;;  %v1031_v55 = vsel %vm466_vm4, %v2981_v54, 0.0 }
 0x797   : > { %1032 = vadd.xlane.f32.xlu1 %v1031_v55 }
 0x79a   : > { %v2983_v56 = vpop.eup %2982 }
 0x79b   : > { %v1040_v57 = vsel %vm466_vm4, %v2983_v56, 0.0  ;;  %v2985_v59 = vpop.eup %2984 }
 0x79c   : > { %1041 = vadd.xlane.f32.xlu1 %v1040_v57  ;;  %v1037_v60 = vsel %vm466_vm4, %v2985_v59, 0.0 }
 0x7a0   : > { %1038 = vadd.xlane.f32.xlu1 %v1037_v60 }
 0x7b1   : > { %793 = vperm.xlu1 %2955, %v785_v24  }
 0x7b5   : > { %2956 = vset.pattern.permute.xlu1 %v3041_v62 }
 0x7b6   : > { %1253 = vperm.xlu1 %2956, %v1248_v61  }
 0x7ba   : > { %1258 = vperm.xlu1 %2956, %v1249_v1  }
 0x820   : > { %v1036_v4 = vpop.xlane.xlu1 %1035 }
 0x824   : > { %v1033_v6 = vpop.xlane.xlu1 %1032 }
 0x825   : > { %2986 = vrcp.f32 %v1033_v6 }
 0x826   : > { %2988 = vrcp.f32 %v1036_v4 }
 0x829   : > { %v1042_v7 = vpop.xlane.xlu1 %1041 }
 0x82a   : > { %2990 = vrcp.f32 %v1042_v7 }
 0x82d   : > { %v1039_v8 = vpop.xlane.xlu1 %1038 }
 0x82e   : > { %2992 = vrcp.f32 %v1039_v8 }
 0x82f   : > { %v2987_v10 = vpop.eup %2986 }
 0x830   : > { %v1044_v11 = vmul.f32 %v2987_v10, %v2981_v54  ;;  %v2989_v14 = vpop.eup %2988 }
 0x831   : > { %v794_v12 = vpop.permute.xlu1 %793  ;;  %v1046_v15 = vmul.f32 %v2989_v14, %v2979_v52 }
 0x832   : > { %v875_v13 = vadd.f32 %v3176_v28, %v794_v12  ;;  %2774 = vmatprep.mubr.msk.f32.mxu0 %vm466_vm4, %v1044_v11 }
 0x834   : > { %2772 = vmatprep.subr.msk.mxu0 %vm466_vm4, %v875_v13  ;;  %v2991_v17 = vpop.eup %2990 }
 0x835   : > { %2773 = vmatpush3.xpose.msk.msra.mxu0 %vm466_vm4, %v875_v13  ;;  %v1050_v20 = vmul.f32 %v2991_v17, %v2983_v56  ;;  %v1254_v26 = vpop.permute.xlu1 %1253  ;;  %v1630_v17 = vld [vmem:[%s3386_s3 + $0x58] sm:$0x3f] }
 0x836   : > { %2791 = vmatprep.subr.mxu0 %v3036_v0 }
 0x838   : > { %v2993_v18 = vpop.eup %2992  ;;  %2775 = vmatmul.mubr.msk.f32.vlgmr.msra.gmra.mrb[10].mxu0 %vm466_vm4, %v1046_v15 }
 0x839   : > { %v1048_v19 = vmul.f32 %v2993_v18, %v2985_v59  ;;  %2792 = vmatpush3.msk.msra.mxu0 %vm1273_vm6, %v3208_v16  ;;  %v1259_v30 = vpop.permute.xlu1 %1258  ;;  %v1722_v18 = vld [vmem:[%s3386_s3 + $0x60] sm:$0xff] }
 0x83b   : > { %2777 = vmatprep.mubr.msk.f32.mxu0 %vm466_vm4, %v1048_v19  ;;  %v1800_v19 = vld [vmem:[%s3386_s3 + $0x68] sm:$0xff] }
 0x83c   : > { %2778 = vmatmul.mubr.msk.f32.gmra.mrb[12].mxu0 %vm466_vm4, %v1050_v20 }
 0x83d   : > { %2793 = vmatprep.mubr.msk.f32.mxu0 %vm3037_vm0, %v3036_v0 }
 0x840   : > { %2794 = vmatmul.mubr.msk.f32.vlgmr.msra.gmra.mrb[14].mxu0 %vm1266_vm7, %v1248_v61 }
 0x841   : > { %2796 = vmatprep.mubr.msk.f32.mxu0 %vm3037_vm0, %v3036_v0 }
 0x844   : > { %2797 = vmatmul.mubr.msk.f32.gmra.mrb[16].mxu0 %vm1266_vm7, %v1249_v1 }
 0x845   : > { %2799 = vmatprep.mubr.msk.f32.mxu0 %vm3037_vm0, %v3036_v0 }
 0x848   : > { %2800 = vmatmul.mubr.msk.f32.gmra.mrb[18].mxu0 %vm1266_vm7, %v1250_v41 }
 0x90b   : > { %v2776_v21 = vpop.f32.mrb[10].mxu0 }
 0x90c   : > { %v1132_v22 = vpop.f32.mrb[11].mxu0 }
 0x90d   : > { %v2897_v23 = vpack.c.bf16 %v2776_v21, %v1132_v22 }
 0x90f   : > { %v2779_v24 = vpop.f32.mrb[12].mxu0  ;;  %2899 = vmatpush3.bf16.xpose.msk.msra.mxu1 %vm3157_vm5, %v2897_v23 }
 0x910   : > { %v1142_v25 = vpop.f32.mrb[13].mxu0  ;;  %2900 = vmatprep.subr.bf16.mxu1 %v3039_v63 }
 0x911   : > { %v2901_v27 = vpack.c.bf16 %v2779_v24, %v1142_v25 }
 0x913   : > { %v1343_v28 = vpop.f32.mrb[14].mxu0 }
 0x914   : > { %v1344_v29 = vadd.f32 %v1343_v28, %v1254_v26  ;;  %v2795_v3 = vpop.f32.mrb[15].mxu0 }
 0x916   : > { %1357 = vxpose.xlu0.b32.start.end [1/1] (short) (narrow) %v1344_v29, 32 }
 0x917   : > { %2903 = vmatpush3.bf16.xpose.msk.msra.mxu1 %vm3157_vm5, %v2901_v27  ;;  %v1348_v31 = vpop.f32.mrb[16].mxu0 }
 0x918   : > { %v1349_v32 = vadd.f32 %v1348_v31, %v1259_v30  ;;  %v2798_v33 = vpop.f32.mrb[17].mxu0 }
 0x91a   : > { %2802 = vmatprep.subr.mxu1 %v1349_v32 }
 0x91b   : > { %v1353_v14 = vpop.f32.mrb[18].mxu0 }
 0x91c   : > { %v2801_v15 = vpop.f32.mrb[19].mxu0 }
 0x91e   : > { %2789 = vmatmul.mubr.msk.f32.vlgmr.msra.gmra.mrb[14].mxu1 %vm368_vm3, %v3231_v34 }
 0x91f   : > { %2803 = vmatpush3.msra.mxu1 %v1349_v32 }
 0x920   : > { %2904 = vmatprep.subr.bf16.mxu1 %v3039_v63 }
 0x93f   : > { %2960 = vset.pattern.permute.xlu0 %v3040_v5 }
 0x996   : > { %v1373_v35 = vpop.trf.xlu0 }
 0x997   : > { %2804 = vmatprep.mubr.msk.f32.mxu1 %vm368_vm3, %v1373_v35 }
 0x99a   : > { %v1374_v36 = vpop.trf.xlu0 }
 0x99b   : > { %2805 = vmatmul.mubr.msk.f32.vlgmr.msra.gmra.mrb[16].mxu1 %vm368_vm3, %v1374_v36 }
 0x99e   : > { %v1375_v37 = vpop.trf.xlu0 }
 0x99f   : > { %2807 = vmatprep.mubr.msk.f32.mxu1 %vm368_vm3, %v1375_v37 }
 0x9a2   : > { %v1376_v38 = vpop.trf.xlu0 }
 0x9a3   : > { %2808 = vmatmul.mubr.msk.f32.gmra.mrb[18].mxu1 %vm368_vm3, %v1376_v38 }
 0x9a4   : > { %2826 = vmatprep.mubr.msk.f32.mxu1 %vm3037_vm0, %v3036_v0 }
 0x9f1   : > { %v3243_v39 = vpop.f32.mrb[14].mxu1 }
 0x9f2   : > { %v2790_v40 = vpop.f32.mrb[15].mxu1 }
 0xa6e   : > { %v2806_v42 = vpop.f32.mrb[16].mxu1 }
 0xa6f   : > { %v1467_v43 = vpop.f32.mrb[17].mxu1  ;;  %v1489_v45 = vsel %vm466_vm4, %v2806_v42, -inf }
 0xa70   : > { %v1486_v44 = vsel %vm466_vm4, %v1467_v43, -inf }
 0xa71   : > { %1487 = vmax.xlane.f32.xlu1 %v1486_v44  ;;  %v1801_v44 = vld [vmem:[%s3386_s3 + $0x70] sm:$0xff] }
 0xa75   : > { %1490 = vmax.xlane.f32.xlu1 %v1489_v45 }
 0xa76   : > { %v2809_v46 = vpop.f32.mrb[18].mxu1 }
 0xa77   : > { %v1477_v47 = vpop.f32.mrb[19].mxu1  ;;  %v1495_v48 = vsel %vm466_vm4, %v2809_v46, -inf }
 0xa78   : > { %1496 = vmax.xlane.f32.xlu0 %v1495_v48  ;;  %v1492_v49 = vsel %vm466_vm4, %v1477_v47, -inf }
 0xa79   : > { %1493 = vmax.xlane.f32.xlu1 %v1492_v49 }
 0xafe   : > { %v1488_v50 = vpop.xlane.xlu1 %1487 }
 0xaff   : > { %v1498_v51 = vsub.f32 %v1467_v43, %v1488_v50 }
 0xb01   : > { %v1502_v54 = vmul.f32 1.442695, %v1498_v51 }
 0xb02   : > { %v1491_v52 = vpop.xlane.xlu1 %1490 }
 0xb03   : > { %v1499_v53 = vsub.f32 %v2806_v42, %v1491_v52 }
 0xb05   : > { %v1504_v55 = vmul.f32 1.442695, %v1499_v53  ;;  %v1497_v56 = vpop.xlane.xlu0 %1496 }
 0xb06   : > { %v1501_v57 = vsub.f32 %v2809_v46, %v1497_v56  ;;  %v1494_v59 = vpop.xlane.xlu1 %1493 }
 0xb07   : > { %2994 = vpow2.f32 %v1504_v55  ;;  %v1500_v61 = vsub.f32 %v1477_v47, %v1494_v59 }
 0xb08   : > { %2996 = vpow2.f32 %v1502_v54  ;;  %v1508_v60 = vmul.f32 1.442695, %v1501_v57 }
 0xb09   : > { %v1506_v1 = vmul.f32 1.442695, %v1500_v61 }
 0xb0a   : > { %2998 = vpow2.f32 %v1508_v60 }
 0xb0b   : > { %3000 = vpow2.f32 %v1506_v1 }
 0xb11   : > { %v2995_v4 = vpop.eup %2994 }
 0xb12   : > { %v1513_v6 = vsel %vm466_vm4, %v2995_v4, 0.0  ;;  %v2997_v7 = vpop.eup %2996 }
 0xb13   : > { %1514 = vadd.xlane.f32.xlu1 %v1513_v6  ;;  %v1510_v8 = vsel %vm466_vm4, %v2997_v7, 0.0 }
 0xb14   : > { %v2999_v10 = vpop.eup %2998 }
 0xb15   : > { %v1519_v11 = vsel %vm466_vm4, %v2999_v10, 0.0  ;;  %v3001_v12 = vpop.eup %3000 }
 0xb16   : > { %v1516_v13 = vsel %vm466_vm4, %v3001_v12, 0.0 }
 0xb17   : > { %1511 = vadd.xlane.f32.xlu1 %v1510_v8 }
 0xb1b   : > { %1520 = vadd.xlane.f32.xlu1 %v1519_v11 }
 0xb1f   : > { %1517 = vadd.xlane.f32.xlu1 %v1516_v13 }
 0xb30   : > { %1263 = vperm.xlu1 %2956, %v1250_v41  }
 0xb34   : > { %2957 = vset.pattern.permute.xlu1 %v3040_v5 }
 0xb35   : > { %1633 = vperm.xlu1 %2957, %v1630_v17  }
 0xb39   : > { %2958 = vset.pattern.permute.xlu1 %v3038_v2 }
 0xb3a   : > { %1725 = vperm.xlu1 %2958, %v1722_v18  }
 0xb3e   : > { %2959 = vset.pattern.permute.xlu1 %v3041_v62 }
 0xb3f   : > { %1804 = vperm.xlu1 %2959, %v1800_v19  }
 0xba0   : > { %v1515_v20 = vpop.xlane.xlu1 %1514 }
 0xba4   : > { %v1512_v21 = vpop.xlane.xlu1 %1511 }
 0xba5   : > { %3002 = vrcp.f32 %v1512_v21 }
 0xba6   : > { %3004 = vrcp.f32 %v1515_v20 }
 0xba8   : > { %v1521_v22 = vpop.xlane.xlu1 %1520 }
 0xba9   : > { %3006 = vrcp.f32 %v1521_v22 }
 0xbac   : > { %v1518_v23 = vpop.xlane.xlu1 %1517 }
 0xbad   : > { %3008 = vrcp.f32 %v1518_v23 }
 0xbaf   : > { %v3003_v24 = vpop.eup %3002 }
 0xbb0   : > { %v1264_v25 = vpop.permute.xlu1 %1263  ;;  %v1523_v26 = vmul.f32 %v3003_v24, %v2997_v7  ;;  %v3005_v27 = vpop.eup %3004 }
 0xbb1   : > { %v1354_v2 = vadd.f32 %v1353_v14, %v1264_v25  ;;  %v1525_v62 = vmul.f32 %v3005_v27, %v2995_v4 }
 0xbb2   : > { %2812 = vmatprep.mubr.msk.f32.mxu0 %vm466_vm4, %v1523_v26 }
 0xbb3   : > { %2810 = vmatprep.subr.msk.mxu0 %vm466_vm4, %v1354_v2  ;;  %v3007_v28 = vpop.eup %3006 }
 0xbb4   : > { %2811 = vmatpush3.xpose.msk.msra.mxu0 %vm466_vm4, %v1354_v2  ;;  %v1529_v30 = vmul.f32 %v3007_v28, %v2999_v10  ;;  %v1634_v32 = vpop.permute.xlu1 %1633 }
 0xbb5   : > { %2829 = vmatprep.subr.mxu0 %v3036_v0 }
 0xbb7   : > { %v3009_v29 = vpop.eup %3008  ;;  %2813 = vmatmul.mubr.msk.f32.vlgmr.msra.gmra.mrb[20].mxu0 %vm466_vm4, %v1525_v62 }
 0xbb8   : > { %v1527_v3 = vmul.f32 %v3009_v29, %v3001_v12  ;;  %2830 = vmatpush3.msk.msra.mxu0 %vm252_vm1, %v3132_v58 }
 0xbb9   : > { %v1726_v40 = vpop.permute.xlu1 %1725 }
 0xbba   : > { %2815 = vmatprep.mubr.msk.f32.mxu0 %vm466_vm4, %v1527_v3 }
 0xbbb   : > { %2816 = vmatmul.mubr.msk.f32.gmra.mrb[22].mxu0 %vm466_vm4, %v1529_v30 }
 0xbbc   : > { %2831 = vmatprep.mubr.msk.f32.mxu0 %vm3037_vm0, %v3036_v0 }
 0xbbe   : > { %v1805_v48 = vpop.permute.xlu1 %1804 }
 0xbbf   : > { %2832 = vmatmul.mubr.msk.f32.vlgmr.msra.gmra.mrb[24].mxu0 %vm245_vm2, %v1722_v18 }
 0xbc0   : > { %2836 = vmatprep.mubr.msk.f32.mxu0 %vm1266_vm7, %v1800_v19 }
 0xc8a   : > { %v2814_v31 = vpop.f32.mrb[20].mxu0 }
 0xc8b   : > { %v1611_v33 = vpop.f32.mrb[21].mxu0 }
 0xc8c   : > { %v2905_v35 = vpack.c.bf16 %v2814_v31, %v1611_v33 }
 0xc8e   : > { %v2817_v36 = vpop.f32.mrb[22].mxu0  ;;  %2907 = vmatpush3.bf16.xpose.msk.msra.mxu1 %vm3157_vm5, %v2905_v35 }
 0xc8f   : > { %v1621_v37 = vpop.f32.mrb[23].mxu0  ;;  %2908 = vmatprep.subr.bf16.mxu1 %v3039_v63 }
 0xc90   : > { %v2909_v38 = vpack.c.bf16 %v2817_v36, %v1621_v37 }
 0xc92   : > { %v1796_v41 = vpop.f32.mrb[24].mxu0 }
 0xc93   : > { %v1797_v42 = vadd.f32 %v1796_v41, %v1726_v40  ;;  %v2833_v43 = vpop.f32.mrb[25].mxu0  ;;  %v2167_v41 = vld [vmem:[%s3386_s3 + $0x78] sm:$0xf] }
 0xc94   : > { %v2260_v43 = vld [vmem:[%s3386_s3 + $0xa8] sm:$0xff] }
 0xc95   : > { %1894 = vxpose.xlu1.b32.start.end [1/1] (short) (narrow) %v1797_v42, 32  ;;  %v2259_v42 = vld [vmem:[%s3386_s3 + $0xa0] sm:$0xff] }
 0xc96   : > { %2911 = vmatpush3.bf16.xpose.msk.msra.mxu1 %vm3157_vm5, %v2909_v38 }
 0xc9d   : > { %2827 = vmatmul.mubr.msk.f32.vlgmr.msra.gmra.mrb[20].mxu1 %vm368_vm3, %v1630_v17 }
 0xcbf   : > { %1809 = vperm.xlu1 %2959, %v1801_v44  }
 0xcc3   : > { %2961 = vset.pattern.permute.xlu1 %v3040_v5 }
 0xcc4   : > { %1154 = vperm.xlu1 %2961, %v3231_v34  }
 0xd15   : > { %v1910_v51 = vpop.trf.xlu1 }
 0xd19   : > { %v1911_v52 = vpop.trf.xlu1 }
 0xd1d   : > { %v1912_v5 = vpop.trf.xlu1 }
 0xd21   : > { %v1913_v53 = vpop.trf.xlu1 }
 0xd3e   : > { %v1810_v34 = vpop.permute.xlu1 %1809 }
 0xd70   : > { %v1716_v45 = vpop.f32.mrb[20].mxu1 }
 0xd71   : > { %v1717_v46 = vadd.f32 %v1716_v45, %v1634_v32  ;;  %v2828_v47 = vpop.f32.mrb[21].mxu1 }
 0xd73   : > { %v1720_v49 = vadd.f32 %v1717_v46, %v3208_v16 }
 0xd75   : > { %v1721_v50 = vmax.f32 %v1720_v49, 0.0 }
 0xd77   : > { %2834 = vmatprep.subr.msk.mxu0 %vm1273_vm6, %v1721_v50 }
 0xd78   : > { %2835 = vmatpush3.msk.msra.mxu0 %vm1273_vm6, %v1721_v50 }
 0xd79   : > { %2837 = vmatmul.mubr.msk.f32.vlgmr.msra.gmra.mrb[26].mxu0 %vm1266_vm7, %v1801_v44  ;;  %v2921_v44 = vpack.c.bf16 %v2260_v43, %v2259_v42 }
 0xd7a   : > { %2841 = vmatprep.mubr.msk.f32.mxu0 %vm368_vm3, %v1910_v51  ;;  %v2261_v51 = vld [vmem:[%s3386_s3 + $0xb0] sm:$0xff] }
 0xe4c   : > { %v2838_v54 = vpop.f32.mrb[26].mxu0 }
 0xe4d   : > { %v1891_v55 = vadd.f32 %v2838_v54, %v1810_v34  ;;  %v1885_v56 = vpop.f32.mrb[27].mxu0 }
 0xe4e   : > { %v1886_v57 = vadd.f32 %v1885_v56, %v1805_v48 }
 0xe4f   : > { %2847 = vmatprep.subr.msk.mxu1 %vm466_vm4, %v1891_v55 }
 0xe50   : > { %2839 = vmatprep.subr.mxu0 %v1886_v57  ;;  %2848 = vmatpush3.xpose.msk.msra.mxu1 %vm466_vm4, %v1891_v55  ;;  %v1244_v55 = vld [vmem:[%s3386_s3 + $0x88] sm:$0xff] }
 0xe51   : > { %2840 = vmatpush3.msra.mxu0 %v1886_v57  ;;  %2920 = vmatprep.subr.bf16.mxu1 %v3039_v63  ;;  %v1155_v57 = vpop.permute.xlu1 %1154 }
 0xe52   : > { %2842 = vmatmul.mubr.msk.f32.vlgmr.msra.gmra.mrb[28].mxu0 %vm368_vm3, %v1911_v52  ;;  %2912 = vmatprep.subr.bf16.mxu0 %v3039_v63  ;;  %v2262_v52 = vld [vmem:[%s3386_s3 + $0xb8] sm:$0xff] }
 0xe53   : > { %2844 = vmatprep.mubr.msk.f32.mxu0 %vm368_vm3, %v1912_v5  ;;  %v2924_v5 = vpack.c.bf16 %v2262_v52, %v2261_v51 }
 0xe56   : > { %2845 = vmatmul.mubr.msk.f32.gmra.mrb[30].mxu0 %vm368_vm3, %v1913_v53 }
 0xe57   : > { %2863 = vmatprep.mubr.msk.f32.mxu0 %vm3037_vm0, %v3036_v0 }
 0xf25   : > { %v2843_v16 = vpop.f32.mrb[28].mxu0 }
 0xf26   : > { %v2004_v59 = vpop.f32.mrb[29].mxu0  ;;  %v2026_v4 = vsel %vm466_vm4, %v2843_v16, -inf }
 0xf27   : > { %v2023_v60 = vsel %vm466_vm4, %v2004_v59, -inf }
 0xf28   : > { %2024 = vmax.xlane.f32.xlu0 %v2023_v60  ;;  %v1238_v60 = vadd.f32 %v3243_v39, %v1155_v57 }
 0xf29   : > { %v2846_v61 = vpop.f32.mrb[30].mxu0 }
 0xf2a   : > { %v2014_v1 = vpop.f32.mrb[31].mxu0  ;;  %v2032_v7 = vsel %vm466_vm4, %v2846_v61, -inf }
 0xf2b   : > { %v2029_v6 = vsel %vm466_vm4, %v2014_v1, -inf }
 0xf2c   : > { %2027 = vmax.xlane.f32.xlu0 %v2026_v4  ;;  %v1246_v4 = vld [vmem:[%s3386_s3 + $0x98] sm:$0xff] }
 0xf30   : > { %2030 = vmax.xlane.f32.xlu0 %v2029_v6 }
 0xf34   : > { %2033 = vmax.xlane.f32.xlu0 %v2032_v7  ;;  %v1241_v7 = vadd.f32 %v1238_v60, %v3132_v58 }
 0xf36   : > { %v1242_v39 = vmax.f32 %v1241_v7, 0.0 }
 0xfb5   : > { %v2025_v8 = vpop.xlane.xlu0 %2024 }
 0xfb6   : > { %v2035_v10 = vsub.f32 %v2004_v59, %v2025_v8  ;;  %v2927_v59 = vpack.c.bf16 %v1244_v55, %v1243_v9 }
 0xfb8   : > { %v2039_v11 = vmul.f32 1.442695, %v2035_v10 }
 0xfb9   : > { %v2028_v12 = vpop.xlane.xlu0 %2027 }
 0xfba   : > { %3010 = vpow2.f32 %v2039_v11  ;;  %v2036_v13 = vsub.f32 %v2843_v16, %v2028_v12  ;;  %v2625_v12 = vld [vmem:[%s3386_s3 + $0xc0] ss:$0 sm:$0xff] }
 0xfbc   : > { %v2041_v14 = vmul.f32 1.442695, %v2036_v13 }
 0xfbd   : > { %v2031_v15 = vpop.xlane.xlu0 %2030 }
 0xfbe   : > { %3012 = vpow2.f32 %v2041_v14  ;;  %v2037_v17 = vsub.f32 %v2014_v1, %v2031_v15  ;;  %v1245_v1 = vld [vmem:[%s3386_s3 + $0x90] sm:$0xff] }
 0xfbf   : > { %v2930_v6 = vpack.c.bf16 %v1246_v4, %v1245_v1 }
 0xfc0   : > { %v2043_v18 = vmul.f32 1.442695, %v2037_v17 }
 0xfc1   : > { %v2034_v19 = vpop.xlane.xlu0 %2033 }
 0xfc2   : > { %3014 = vpow2.f32 %v2043_v18  ;;  %v2038_v20 = vsub.f32 %v2846_v61, %v2034_v19 }
 0xfc4   : > { %v3011_v21 = vpop.eup %3010  ;;  %v2045_v22 = vmul.f32 1.442695, %v2038_v20 }
 0xfc5   : > { %v2047_v23 = vsel %vm466_vm4, %v3011_v21, 0.0 }
 0xfc6   : > { %3016 = vpow2.f32 %v2045_v22  ;;  %2048 = vadd.xlane.f32.xlu0 %v2047_v23 }
 0xfc8   : > { %v3013_v24 = vpop.eup %3012 }
 0xfc9   : > { %v2050_v25 = vsel %vm466_vm4, %v3013_v24, 0.0 }
 0xfca   : > { %2051 = vadd.xlane.f32.xlu0 %v2050_v25 }
 0xfcc   : > { %v3015_v26 = vpop.eup %3014 }
 0xfcd   : > { %v2053_v2 = vsel %vm466_vm4, %v3015_v26, 0.0 }
 0xfce   : > { %2054 = vadd.xlane.f32.xlu0 %v2053_v2 }
 0xfd0   : > { %v3017_v27 = vpop.eup %3016 }
 0xfd1   : > { %v2056_v62 = vsel %vm466_vm4, %v3017_v27, 0.0 }
 0xfd2   : > { %2057 = vadd.xlane.f32.xlu0 %v2056_v62 }
 0xfe8   : > { %2170 = vperm.xlu0 %2960, %v2167_v41  }
0x1053   : > { %v2049_v28 = vpop.xlane.xlu0 %2048 }
0x1054   : > { %3018 = vrcp.f32 %v2049_v28 }
0x1057   : > { %v2052_v29 = vpop.xlane.xlu0 %2051 }
0x1058   : > { %3020 = vrcp.f32 %v2052_v29 }
0x105b   : > { %v2055_v3 = vpop.xlane.xlu0 %2054 }
0x105c   : > { %3022 = vrcp.f32 %v2055_v3 }
0x105e   : > { %v3019_v30 = vpop.eup %3018 }
0x105f   : > { %v2058_v31 = vpop.xlane.xlu0 %2057  ;;  %v2060_v32 = vmul.f32 %v3019_v30, %v3011_v21 }
0x1060   : > { %3024 = vrcp.f32 %v2058_v31 }
0x1061   : > { %2849 = vmatprep.mubr.msk.f32.mxu1 %vm466_vm4, %v2060_v32 }
0x1062   : > { %v3021_v33 = vpop.eup %3020 }
0x1063   : > { %v2062_v35 = vmul.f32 %v3021_v33, %v3013_v24 }
0x1065   : > { %2850 = vmatmul.mubr.msk.f32.vlgmr.msra.gmra.mrb[22].mxu1 %vm466_vm4, %v2062_v35 }
0x1066   : > { %v3023_v36 = vpop.eup %3022  ;;  %2922 = vmatpush3.bf16.msra.mxu1 %v2921_v44 }
0x1067   : > { %v2064_v37 = vmul.f32 %v3023_v36, %v3015_v26  ;;  %2923 = vmatprep.subr.bf16.mxu1 %v3039_v63  ;;  %v2171_v53 = vpop.permute.xlu0 %2170  ;;  %v2446_v36 = vld [vmem:[%s3386_s3 + $0xc8] sm:$0xf] }
0x1069   : > { %2852 = vmatprep.mubr.msk.f32.mxu1 %vm466_vm4, %v2064_v37 }
0x106a   : > { %v3025_v38 = vpop.eup %3024  ;;  %2925 = vmatpush3.bf16.msra.mxu1 %v2924_v5 }
0x106b   : > { %v2066_v40 = vmul.f32 %v3025_v38, %v3017_v27  ;;  %2926 = vmatprep.subr.bf16.mxu1 %v3039_v63  ;;  %v2448_v38 = vld [vmem:[%s3386_s3 + $0xd0] sm:$0xf] }
0x106d   : > { %2853 = vmatmul.mubr.msk.f32.gmra.mrb[24].mxu1 %vm466_vm4, %v2066_v40 }
0x106e   : > { %2874 = vmatprep.mubr.msk.f32.mxu1 %vm3037_vm0, %v3036_v0 }
0x1138   : > { %v2851_v45 = vpop.f32.mrb[22].mxu1 }
0x1139   : > { %v2148_v46 = vpop.f32.mrb[23].mxu1 }
0x113a   : > { %v2913_v47 = vpack.c.bf16 %v2851_v45, %v2148_v46 }
0x113c   : > { %2915 = vmatpush3.bf16.xpose.msk.msra.mxu0 %vm3157_vm5, %v2913_v47 }
0x113d   : > { %2916 = vmatprep.subr.bf16.mxu0 %v3039_v63 }
0x1140   : > { %v2854_v48 = vpop.f32.mrb[24].mxu1 }
0x1141   : > { %v2158_v49 = vpop.f32.mrb[25].mxu1 }
0x1142   : > { %v2917_v50 = vpack.c.bf16 %v2854_v48, %v2158_v49 }
0x1144   : > { %2919 = vmatpush3.bf16.xpose.msk.msra.mxu0 %vm3157_vm5, %v2917_v50 }
0x114b   : > { %2864 = vmatmul.mubr.msk.f32.vlgmr.msra.gmra.mrb[32].mxu0 %vm368_vm3, %v2167_v41 }
0x121e   : > { %v2253_v34 = vpop.f32.mrb[32].mxu0 }
0x121f   : > { %v2254_v54 = vadd.f32 %v2253_v34, %v2171_v53  ;;  %v2865_v56 = vpop.f32.mrb[33].mxu0 }
0x1221   : > { %v2257_v16 = vadd.f32 %v2254_v54, %v3132_v58 }
0x1223   : > { %v2258_v61 = vmax.f32 %v2257_v16, 0.0 }
0x1225   : > { %2875 = vmatmul.mubr.msk.f32.vlgmr.msra.gmra.mrb[26].mxu1 %vm466_vm4, %v2258_v61 }
0x1226   : > { %2928 = vmatpush3.bf16.msra.mxu1 %v2927_v59  ;;  %2885 = vmatprep.mubr.msk.f32.mxu1 %vm3037_vm0, %v3036_v0 }
0x1227   : > { %2929 = vmatprep.subr.bf16.mxu1 %v3039_v63 }
0x122a   : > { %2931 = vmatpush3.bf16.msra.mxu1 %v2930_v6 }
0x122d   : > { %2886 = vmatmul.mubr.msk.f32.vlgmr.msra.gmra.mrb[28].mxu1 %vm466_vm4, %v1242_v39 }
0x12f8   : > { %v2332_v8 = vpop.f32.mrb[26].mxu1 }
0x12f9   : > { %v2876_v10 = vpop.f32.mrb[27].mxu1 }
0x1300   : > { %v2405_v11 = vpop.f32.mrb[28].mxu1 }
0x1301   : > { %v2406_v13 = vadd.f32 %v2405_v11, %v2332_v8  ;;  %v2887_v14 = vpop.f32.mrb[29].mxu1 }
0x1303   : > { %v2414_v15 = vadd.f32 %v2625_v12, %v2406_v13 }
0x1305   : > { %v2416_v0 = vsel %vm2415_vm8, %v2414_v15, 0.0 }
0x1306   : > { %2417 = vadd.xlane.f32.xlu1 %v2416_v0 }
0x1393   : > { %v2418_v58 = vpop.xlane.xlu1 %2417 }
0x1394   : > { %v2419_v63 = vrot.slane %v2418_v58, 4 }
0x1396   : > { %v2420_v17 = vadd.f32 %v2419_v63, %v2418_v58 }
0x1398   : > { %v2421_v18 = vrot.slane %v2420_v17, 2 }
0x139a   : > { %v2422_v19 = vadd.f32 %v2421_v18, %v2420_v17 }
0x139c   : > { %v2423_v20 = vrot.slane %v2422_v19, 1 }
0x139e   : > { %v2424_v21 = vadd.f32 %v2423_v20, %v2422_v19 }
0x13a0   : > { %2932 = vpush %v2424_v21 }
0x13d1   : > { %s2933_s30 = spop %2932 }
0x13d2   : > { %v2426_v22 = vstv %s2933_s30 }
0x13d3   : > { %v2428_v23 = vmul.f32 0.0078125, %v2426_v22 }
0x13d5   : > { %v2429_v24 = vsub.f32 %v2414_v15, %v2428_v23 }
0x13d7   : > { %v2430_v25 = vmul.f32 %v2429_v24, %v2429_v24 }
0x13d9   : > { %v2431_v26 = vsel %vm2415_vm8, %v2430_v25, 0.0 }
0x13da   : > { %2432 = vadd.xlane.f32.xlu0 %v2431_v26 }
0x1467   : > { %v2433_v2 = vpop.xlane.xlu0 %2432 }
0x1468   : > { %v2434_v27 = vrot.slane %v2433_v2, 4 }
0x146a   : > { %v2435_v62 = vadd.f32 %v2434_v27, %v2433_v2 }
0x146c   : > { %v2436_v28 = vrot.slane %v2435_v62, 2 }
0x146e   : > { %v2437_v29 = vadd.f32 %v2436_v28, %v2435_v62 }
0x1470   : > { %v2438_v3 = vrot.slane %v2437_v29, 1 }
0x1472   : > { %v2439_v30 = vadd.f32 %v2438_v3, %v2437_v29 }
0x1474   : > { %2934 = vpush %v2439_v30 }
0x14a5   : > { %s2935_s5 = spop %2934 }
0x14a6   : > { %v2441_v31 = vstv %s2935_s5 }
0x14a7   : > { %v2442_v32 = vmul.f32 0.0078125, %v2441_v31 }
0x14a9   : > { %v2443_v33 = vadd.f32 1e-05, %v2442_v32 }
0x14ab   : > { %3026 = vrsqrt.f32 %v2443_v33 }
0x14b5   : > { %v3027_v35 = vpop.eup %3026 }
0x14b6   : > { %v2445_v37 = vmul.f32 %v3027_v35, %v2429_v24 }
0x14b8   : > { %v2447_v40 = vmul.f32 %v2446_v36, %v2445_v37 }
0x14ba   : > { %v2449_v41 = vadd.f32 %v2448_v38, %v2447_v40 }
0x14bc   : > { %v2450_v42 = vmax.f32 %v2449_v41, 0.0 }
0x14be   : > { %v2456_v43 = vrot.slane %v2450_v42, 2  ;;  %v2452_v44 = vrot.slane %v2450_v42, 1  ;;  %v2460_v45 = vrot.slane %v2450_v42, 3 }
0x14c0   : > { %2457 = vrot.lane.b32.xlu1 %v2456_v43, %s3042_s10  ;;  %2453 = vrot.lane.b32.xlu0 %v2452_v44, %s3043_s11 }
0x14c4   : > { %2461 = vrot.lane.b32.xlu1 %v2460_v45, %s3044_s12 }
0x1532   : > { %v2458_v46 = vpop.permute.xlu1 %2457  ;;  %v2454_v47 = vpop.permute.xlu0 %2453 }
0x1533   : > { %v2464_v48 = vsel %vm466_vm4, %v2450_v42, %v2454_v47 }
0x1534   : > { %v2466_v50 = vsel %vm2465_vm9, %v2464_v48, %v2458_v46 }
0x1536   : > { %v2462_v49 = vpop.permute.xlu1 %2461 }
0x1537   : > { %v2468_v51 = vsel %vm2467_vm10, %v2466_v50, %v2462_v49 }
0x1538   : > { %2469 = vst [vmem:[%s224_s17] sm:$0x1] %v2468_v51 }
0x1539 PF: > { %s14_s15 = sadd.s32 1, %s3034_s15  }
0x153a   : > { %p11_p4 = scmp.ge.s32.totalorder %s14_s15, 4  }
0x153c   :  { %13 = sbr.rel (!%p11_p4) target bundleno = 1 (0x1), region = 72 }

</bundles_post_ra>
